<compile_context>
chip_gen: v5e
topology: v5e:2x2
jax: 0.10.0
libtpu: 0.0.40
codegen_flags: <defaults>
</compile_context>

<pallas_src>
import jax
import jax.numpy as jnp
from jax import lax
from jax.experimental import pallas as pl
from jax.experimental.pallas import tpu as pltpu


def _leaky_relu(x, slope=0.2):
    return jnp.where(x > 0, x, slope * x)


def discriminator_kernel(x_ref, w1_ref, b1_ref, w2_ref, b2_ref, w3_ref, b3_ref,
                         o_ref):
    # x_ref:  (tb, 784) f32     w1_ref: (784, 512) bf16   b1_ref: (1, 512) f32
    # w2_ref: (512, 256) bf16   b2_ref: (1, 256) f32
    # w3_ref: (8, 256) bf16 (row 0 = w3^T, rows 1..7 zero)
    # b3_ref: (1, 1) f32        o_ref:  (8, tb) f32 (row 0 = logits)

    # Layer 1: in-kernel bf16 cast + MXU matmul with f32 accumulation;
    # bias + LeakyReLU stay f32 on the VPU.
    x = x_ref[...].astype(jnp.bfloat16)                              # (tb, 784)
    h1 = jnp.dot(x, w1_ref[...], preferred_element_type=jnp.float32)
    h1 = _leaky_relu(h1 + b1_ref[...])                               # (tb, 512) f32

    # Layer 2: same pattern.
    h2 = jnp.dot(h1.astype(jnp.bfloat16), w2_ref[...],
                 preferred_element_type=jnp.float32)
    h2 = _leaky_relu(h2 + b2_ref[...])                               # (tb, 256) f32

    # Layer 3 (out_features = 1): contract w3 (8,256) against h2's last dim
    # ("A @ B^T" on the MXU) so the result is already lane-dense: (8, tb) with the
    # real logits in row 0.  This gives unmasked, contiguous output stores.
    out8 = lax.dot_general(
        w3_ref[...], h2.astype(jnp.bfloat16),
        dimension_numbers=(((1,), (1,)), ((), ())),
        preferred_element_type=jnp.float32)                          # (8, tb) f32
    o_ref[...] = (out8 + b3_ref[...]).astype(o_ref.dtype)


def _pick_tb(batch, max_tb=1024):
    """Batch tile size.

    * B <= 256: one tile covering the whole batch (block dim == array dim is always
      legal, no redundant rows).
    * B  > 256: split into >= 2 grid steps (v7x megacore), lane-friendly multiple of
      128, capped at max_tb to bound VMEM.
    """
    if batch <= 256:
        return batch
    half = pl.cdiv(batch, 2)
    tb = ((half + 127) // 128) * 128
    return min(max_tb, tb)


def prepare_params(params):
    """One-time conversion of f32 (in, out)-layout params to kernel layout.

    Call once and reuse; this keeps weight casting/reshaping out of the per-call
    forward path (the kernel then only ever DMAs the prepared arrays).
    """
    w1, b1, w2, b2, w3, b3 = params
    H2 = w2.shape[1]                                   # 256
    w1_b = w1.astype(jnp.bfloat16)                     # (784, 512)
    w2_b = w2.astype(jnp.bfloat16)                     # (512, 256)
    # w3 as an 8-row sublane-aligned block: row 0 is the real weight row.
    w3_p = jnp.zeros((8, H2), jnp.bfloat16).at[0, :].set(
        w3.reshape(-1).astype(jnp.bfloat16))           # (8, 256)
    b1_f = b1.reshape(1, -1).astype(jnp.float32)       # (1, 512)
    b2_f = b2.reshape(1, -1).astype(jnp.float32)       # (1, 256)
    b3_f = b3.reshape(1, 1).astype(jnp.float32)        # (1, 1)
    return (w1_b, b1_f, w2_b, b2_f, w3_p, b3_f)


def discriminator_forward(img, kernel_params, *, max_tb=1024):
    """img: (B, 1, 28, 28) float32 (NCHW).  kernel_params: from prepare_params().

    Returns (B, 1) float32 logits.
    """
    w1, b1, w2, b2, w3, b3 = kernel_params
    B = img.shape[0]
    x = img.reshape(B, -1)                             # (B, 784), metadata-only
    K = x.shape[1]                                     # 784
    H1 = w1.shape[1]                                   # 512
    H2 = w2.shape[1]                                   # 256

    tb = _pick_tb(B, max_tb)
    n_tiles = pl.cdiv(B, tb)
    resident = lambda shape: pl.BlockSpec(shape, lambda i: (0, 0))

    out = pl.pallas_call(
        discriminator_kernel,
        out_shape=jax.ShapeDtypeStruct((8, n_tiles * tb), jnp.float32),
        grid=(n_tiles,),
        in_specs=[
            pl.BlockSpec((tb, K), lambda i: (i, 0)),   # x: batch-tiled, raw f32
            resident((K, H1)),                         # w1 (resident, bf16)
            resident((1, H1)),                         # b1
            resident((H1, H2)),                        # w2 (resident, bf16)
            resident((1, H2)),                         # b2
            resident((8, H2)),                         # w3 (8-row block, bf16)
            resident((1, 1)),                          # b3
        ],
        out_specs=pl.BlockSpec((8, tb), lambda i: (0, i)),   # lane-dense logits row
        compiler_params=pltpu.CompilerParams(
            dimension_semantics=("parallel",)),
    )(x, w1, b1, w2, b2, w3, b3)

    # Row 0 holds the real logits; trailing columns (if the last block was partial)
    # are padding and must be sliced off.
    return out[0, :B].reshape(B, 1)


def init_params(key):
    """Deterministic parameter init matching torch.nn.Linear shapes.

    Torch stores Linear weights as (out, in); we store the transpose (in, out)
    so the kernel computes x @ W + b directly.
    """
    k1, k2, k3, k4, k5, k6 = jax.random.split(key, 6)

    def uniform_init(k, shape, fan_in):
        bound = 1.0 / jnp.sqrt(fan_in)
        return jax.random.uniform(k, shape, jnp.float32, -bound, bound)

    w1 = uniform_init(k1, (784, 512), 784)
    b1 = uniform_init(k2, (1, 512), 784)
    w2 = uniform_init(k3, (512, 256), 512)
    b2 = uniform_init(k4, (1, 256), 512)
    w3 = uniform_init(k5, (256, 1), 256)
    b3 = uniform_init(k6, (1, 1), 256)
    return (w1, b1, w2, b2, w3, b3)


def reference_forward_f32(img, params):
    """Plain-JAX f32 reference (matches the PyTorch module semantics)."""
    w1, b1, w2, b2, w3, b3 = params
    x = img.reshape(img.shape[0], -1)
    h1 = _leaky_relu(x @ w1 + b1)
    h2 = _leaky_relu(h1 @ w2 + b2)
    return h2 @ w3 + b3


def reference_forward_bf16(img, params):
    """Reference emulating the kernel's bf16-matmul / f32-accumulate path."""
    w1, b1, w2, b2, w3, b3 = params
    x = img.reshape(img.shape[0], -1).astype(jnp.bfloat16)
    h1 = jnp.dot(x, w1.astype(jnp.bfloat16),
                 preferred_element_type=jnp.float32) + b1
    h1 = _leaky_relu(h1)
    h2 = jnp.dot(h1.astype(jnp.bfloat16), w2.astype(jnp.bfloat16),
                 preferred_element_type=jnp.float32) + b2
    h2 = _leaky_relu(h2)
    return jnp.dot(h2.astype(jnp.bfloat16), w3.astype(jnp.bfloat16),
                   preferred_element_type=jnp.float32) + b3


if __name__ == "__main__":
    key = jax.random.PRNGKey(0)
    k_params, k_img = jax.random.split(key)

    params = init_params(k_params)
    kernel_params = prepare_params(params)   # one-time weight prep (hoisted)

    # MNIST-shaped input: batch=2, NCHW (2, 1, 28, 28) => flattens to (2, 784)
    img = jax.random.normal(k_img, (2, 1, 28, 28), jnp.float32)

    fwd = jax.jit(discriminator_forward)
    out = jax.block_until_ready(fwd(img, kernel_params))
    assert out.shape == (2, 1), out.shape

    # Tight check against a bf16-matmul-emulating reference (same arithmetic path).
    ref_bf16 = reference_forward_bf16(img, params)
    assert jnp.allclose(out, ref_bf16, atol=2e-3, rtol=2e-3), (out, ref_bf16)

    # Loose check against the full-f32 PyTorch-equivalent reference.
    # (bf16 matmul operands are an intentional precision trade-off.)
    ref_f32 = reference_forward_f32(img, params)
    assert jnp.allclose(out, ref_f32, atol=5e-2, rtol=5e-2), (out, ref_f32)

    print("KERNEL_OK")
</pallas_src>

<mosaic_0001>
module attributes {stable_mosaic.version = 11 : i64} {
  func.func @discriminator_kernel(%arg0: i32, %arg1: memref<2x784xf32, #tpu.memory_space<vmem>>, %arg2: memref<784x512xbf16, #tpu.memory_space<vmem>>, %arg3: memref<1x512xf32, #tpu.memory_space<vmem>>, %arg4: memref<512x256xbf16, #tpu.memory_space<vmem>>, %arg5: memref<1x256xf32, #tpu.memory_space<vmem>>, %arg6: memref<8x256xbf16, #tpu.memory_space<vmem>>, %arg7: memref<1x1xf32, #tpu.memory_space<vmem>>, %arg8: memref<8x2xf32, #tpu.memory_space<vmem>>) attributes {dimension_semantics = [#tpu.dimension_semantics<parallel>], iteration_bounds = array<i64: 1>, scalar_prefetch = 0 : i64, scratch_operands = 0 : i64, tpu.core_type = #tpu.core_type<tc>, window_params = [{transform_indices = @transform_0, window_bounds = array<i64: 2, 784>}, {pipeline_mode = #tpu.pipeline_mode<synchronous>, transform_indices = @transform_1, window_bounds = array<i64: 784, 512>}, {pipeline_mode = #tpu.pipeline_mode<synchronous>, transform_indices = @transform_2, window_bounds = array<i64: 1, 512>}, {pipeline_mode = #tpu.pipeline_mode<synchronous>, transform_indices = @transform_3, window_bounds = array<i64: 512, 256>}, {pipeline_mode = #tpu.pipeline_mode<synchronous>, transform_indices = @transform_4, window_bounds = array<i64: 1, 256>}, {pipeline_mode = #tpu.pipeline_mode<synchronous>, transform_indices = @transform_5, window_bounds = array<i64: 8, 256>}, {pipeline_mode = #tpu.pipeline_mode<synchronous>, transform_indices = @transform_6, window_bounds = array<i64: 1, 1>}, {transform_indices = @transform_7, window_bounds = array<i64: 8, 2>}]} {
    %c0 = arith.constant 0 : index
    %c0_0 = arith.constant 0 : index
    %0 = vector.load %arg1[%c0, %c0_0] : memref<2x784xf32, #tpu.memory_space<vmem>>, vector<2x784xf32>
    %1 = arith.truncf %0 : vector<2x784xf32> to vector<2x784xbf16>
    %c0_1 = arith.constant 0 : index
    %c0_2 = arith.constant 0 : index
    %2 = vector.load %arg2[%c0_1, %c0_2] : memref<784x512xbf16, #tpu.memory_space<vmem>>, vector<784x512xbf16>
    %cst = arith.constant dense<0.000000e+00> : vector<2x512xf32>
    %3 = tpu.matmul %1, %2, %cst {dimension_numbers = #tpu.dot_dimension_numbers<[1], [0], [0], [1], [0, 0, 1, 1], [], []>} : vector<2x784xbf16>, vector<784x512xbf16>, vector<2x512xf32> -> vector<2x512xf32>
    %c0_3 = arith.constant 0 : index
    %c0_4 = arith.constant 0 : index
    %4 = vector.load %arg3[%c0_3, %c0_4] : memref<1x512xf32, #tpu.memory_space<vmem>>, vector<1x512xf32>
    %5 = vector.broadcast %4 : vector<1x512xf32> to vector<2x512xf32>
    %6 = arith.addf %3, %5 : vector<2x512xf32>
    %cst_5 = arith.constant 0.000000e+00 : f32
    %7 = vector.broadcast %cst_5 : f32 to vector<2x512xf32>
    %8 = arith.cmpf ogt, %6, %7 : vector<2x512xf32>
    %cst_6 = arith.constant 2.000000e-01 : f32
    %9 = vector.broadcast %cst_6 : f32 to vector<2x512xf32>
    %10 = arith.mulf %9, %6 : vector<2x512xf32>
    %11 = arith.select %8, %6, %10 : vector<2x512xi1>, vector<2x512xf32>
    %12 = arith.truncf %11 : vector<2x512xf32> to vector<2x512xbf16>
    %c0_7 = arith.constant 0 : index
    %c0_8 = arith.constant 0 : index
    %13 = vector.load %arg4[%c0_7, %c0_8] : memref<512x256xbf16, #tpu.memory_space<vmem>>, vector<512x256xbf16>
    %cst_9 = arith.constant dense<0.000000e+00> : vector<2x256xf32>
    %14 = tpu.matmul %12, %13, %cst_9 {dimension_numbers = #tpu.dot_dimension_numbers<[1], [0], [0], [1], [0, 0, 1, 1], [], []>} : vector<2x512xbf16>, vector<512x256xbf16>, vector<2x256xf32> -> vector<2x256xf32>
    %c0_10 = arith.constant 0 : index
    %c0_11 = arith.constant 0 : index
    %15 = vector.load %arg5[%c0_10, %c0_11] : memref<1x256xf32, #tpu.memory_space<vmem>>, vector<1x256xf32>
    %16 = vector.broadcast %15 : vector<1x256xf32> to vector<2x256xf32>
    %17 = arith.addf %14, %16 : vector<2x256xf32>
    %cst_12 = arith.constant 0.000000e+00 : f32
    %18 = vector.broadcast %cst_12 : f32 to vector<2x256xf32>
    %19 = arith.cmpf ogt, %17, %18 : vector<2x256xf32>
    %cst_13 = arith.constant 2.000000e-01 : f32
    %20 = vector.broadcast %cst_13 : f32 to vector<2x256xf32>
    %21 = arith.mulf %20, %17 : vector<2x256xf32>
    %22 = arith.select %19, %17, %21 : vector<2x256xi1>, vector<2x256xf32>
    %c0_14 = arith.constant 0 : index
    %c0_15 = arith.constant 0 : index
    %23 = vector.load %arg6[%c0_14, %c0_15] : memref<8x256xbf16, #tpu.memory_space<vmem>>, vector<8x256xbf16>
    %24 = arith.truncf %22 : vector<2x256xf32> to vector<2x256xbf16>
    %cst_16 = arith.constant dense<0.000000e+00> : vector<8x2xf32>
    %25 = tpu.matmul %23, %24, %cst_16 {dimension_numbers = #tpu.dot_dimension_numbers<[1], [1], [0], [0], [0, 0, 1, 0], [], []>} : vector<8x256xbf16>, vector<2x256xbf16>, vector<8x2xf32> -> vector<8x2xf32>
    %c0_17 = arith.constant 0 : index
    %c0_18 = arith.constant 0 : index
    %26 = vector.load %arg7[%c0_17, %c0_18] : memref<1x1xf32, #tpu.memory_space<vmem>>, vector<1x1xf32>
    %27 = vector.broadcast %26 : vector<1x1xf32> to vector<8x2xf32>
    %28 = arith.addf %25, %27 : vector<8x2xf32>
    %c0_19 = arith.constant 0 : index
    %c0_20 = arith.constant 0 : index
    %29 = vector.load %arg8[%c0_19, %c0_20] : memref<8x2xf32, #tpu.memory_space<vmem>>, vector<8x2xf32>
    tpu.vector_store %arg8[%c0_19, %c0_20], %28 {strides = array<i32>} : memref<8x2xf32, #tpu.memory_space<vmem>>, vector<8x2xf32>,
    return
  }
  func.func @transform_0(%arg0: i32) -> (i32, i32) {
    %c0_i32 = arith.constant 0 : i32
    %c0_i32_0 = arith.constant 0 : i32
    return %arg0, %c0_i32 : i32, i32
  }
  func.func @transform_1(%arg0: i32) -> (i32, i32) {
    %c0_i32 = arith.constant 0 : i32
    %c0_i32_0 = arith.constant 0 : i32
    %c0_i32_1 = arith.constant 0 : i32
    return %c0_i32, %c0_i32_0 : i32, i32
  }
  func.func @transform_2(%arg0: i32) -> (i32, i32) {
    %c0_i32 = arith.constant 0 : i32
    %c0_i32_0 = arith.constant 0 : i32
    %c0_i32_1 = arith.constant 0 : i32
    return %c0_i32, %c0_i32_0 : i32, i32
  }
  func.func @transform_3(%arg0: i32) -> (i32, i32) {
    %c0_i32 = arith.constant 0 : i32
    %c0_i32_0 = arith.constant 0 : i32
    %c0_i32_1 = arith.constant 0 : i32
    return %c0_i32, %c0_i32_0 : i32, i32
  }
  func.func @transform_4(%arg0: i32) -> (i32, i32) {
    %c0_i32 = arith.constant 0 : i32
    %c0_i32_0 = arith.constant 0 : i32
    %c0_i32_1 = arith.constant 0 : i32
    return %c0_i32, %c0_i32_0 : i32, i32
  }
  func.func @transform_5(%arg0: i32) -> (i32, i32) {
    %c0_i32 = arith.constant 0 : i32
    %c0_i32_0 = arith.constant 0 : i32
    %c0_i32_1 = arith.constant 0 : i32
    return %c0_i32, %c0_i32_0 : i32, i32
  }
  func.func @transform_6(%arg0: i32) -> (i32, i32) {
    %c0_i32 = arith.constant 0 : i32
    %c0_i32_0 = arith.constant 0 : i32
    %c0_i32_1 = arith.constant 0 : i32
    return %c0_i32, %c0_i32_0 : i32, i32
  }
  func.func @transform_7(%arg0: i32) -> (i32, i32) {
    %c0_i32 = arith.constant 0 : i32
    %c0_i32_0 = arith.constant 0 : i32
    return %c0_i32, %arg0 : i32, i32
  }
}

</mosaic_0001>

<bundles_post_ra>
// kernel: discriminator_forward.1
= control target key start
LH: loop header
LB: loop body
LE: loop exit
PB: predicated region body
PF: predicated region fallthrough
CT: control target
= control target key end

     0   :  { %s3720_s0 = inlined_call_operand.vmem [shape: f32[2,784], index: 0, kind: input, shape index: {}]   ;;  %s3721_s1 = inlined_call_operand.hbm [shape: bf16[784,512], index: 1, kind: input, shape index: {}]   ;;  %s3722_s2 = inlined_call_operand.vmem [shape: f32[1,512], index: 2, kind: input, shape index: {}]   ;;  %s3723_s3 = inlined_call_operand.hbm [shape: bf16[512,256], index: 3, kind: input, shape index: {}]   ;;  %s3724_s4 = inlined_call_operand.vmem [shape: f32[1,256], index: 4, kind: input, shape index: {}]   ;;  %s3725_s5 = inlined_call_operand.vmem [shape: bf16[8,256], index: 5, kind: input, shape index: {}]   ;;  %s3726_s6 = inlined_call_operand.<no memory space> [shape: f32[1,1], index: 6, kind: input, shape index: {}]   ;;  %s3727_s7 = inlined_call_operand.vmem [shape: f32[8,2], index: 7, kind: output, shape index: {}]  }
   0x1   :  { %v12_v0 = vstv %s3726_s6 }
   0x2   :  { %13 = vst [vmem:[#allocation2] sm:$0x1] %v12_v0 }
   0x3   :  { %14 = vsyncpa [#allocation4], 0  ;;  %s22_s28 = sshll.u32 %s3721_s1, 4  ;;  %s23_s28 = int_to_ptr.hbm [resolvable:$true] %s22_s28 }
   0x4   :  { %15 = vsyncpa [#allocation6], 0  ;;  %s3575_s29 = smov [#allocation3]   ;;  %s37_s10 = sshll.u32 %s3723_s3, 4  ;;  %s38_s10 = int_to_ptr.hbm [resolvable:$true] %s37_s10 }
   0x5   :  { %s24_s30 = sshll.u32 %s3575_s29, 4  ;;  %s3576_s11 = smov 256   ;;  %s25_s30 = int_to_ptr.vmem [resolvable:$true] %s24_s30 }
   0x6   :  { %s3577_s12 = smov 16   ;;  %s3578_s6 = smov [#allocation5]  }
   0x7   :  { %30 = dma.hbm_to_vmem [thread:$0]  %s23_s28, 25088, %s25_s30, [#allocation4], %s3576_s11, %s3576_s11, %s3577_s12  }
   0x8   :  { %s39_s13 = sshll.u32 %s3578_s6, 4  ;;  %s3579_s14 = smov 128   ;;  %s40_s13 = int_to_ptr.vmem [resolvable:$true] %s39_s13 }
   0x9   :  { %s3580_s15 = smov 8  }
   0xa   :  { %45 = dma.hbm_to_vmem [thread:$0]  %s38_s10, 8192, %s40_s13, [#allocation6], %s3579_s14, %s3579_s14, %s3580_s15  }
   0xb   :  { %3571 = dma.done.wait [#allocation4], 25088  }
   0xc   :  { %3572 = vsyncadd [#allocation4], 4294942208 }
   0xd   :  { %3573 = dma.done.wait [#allocation6], 8192  }
   0xe   :  { %3574 = vsyncadd [#allocation6], 4294959104  ;;  %v2324_v1 = vld [vmem:[#allocation3 + $0xe0] sm:$0xf]  ;;  %v3284_v2 = vld [vmem:[#allocation3 + $0xec] sm:$0xf0] }
   0xf   :  { %v2452_v3 = vld [vmem:[#allocation3 + $0x1e0] sm:$0xf]  ;;  %v2325_v4 = vor.u32 %v3284_v2, %v2324_v1  ;;  %v3316_v5 = vld [vmem:[#allocation3 + $0x1ec] sm:$0xf0]  ;;  %vm1275_vm0 = vcmask 130048   ;;  %vm2202_vm7 = vcmask 15360  }
  0x10   :  { %v2580_v6 = vld [vmem:[#allocation3 + $0x2e0] sm:$0xf]  ;;  %v3348_v7 = vld [vmem:[#allocation3 + $0x2ec] sm:$0xf0]  ;;  %v2453_v8 = vor.u32 %v3316_v5, %v2452_v3 }
  0x11   :  { %v2581_v9 = vor.u32 %v3348_v7, %v2580_v6  ;;  %v2708_v10 = vld [vmem:[#allocation3 + $0x3e0] sm:$0xf]  ;;  %v3380_v11 = vld [vmem:[#allocation3 + $0x3ec] sm:$0xf0]  ;;  %1279 = vmatpush.bf16.msra.mxu0 %v2325_v4 }
  0x12   :  { %v2308_v12 = vld [vmem:[#allocation3 + $0xc0] sm:$0xf]  ;;  %v2709_v13 = vor.u32 %v3380_v11, %v2708_v10  ;;  %v3280_v14 = vld [vmem:[#allocation3 + $0xcc] sm:$0xf0]  ;;  %1292 = vmatpush.bf16.msra.mxu1 %v2453_v8 }
  0x13   :  { %v2436_v15 = vld [vmem:[#allocation3 + $0x1c0] sm:$0xf]  ;;  %v3312_v16 = vld [vmem:[#allocation3 + $0x1cc] sm:$0xf0]  ;;  %1305 = vmatpush.bf16.msra.mxu2 %v2581_v9  ;;  %v2309_v17 = vor.u32 %v3280_v14, %v2308_v12 }
  0x14   :  { %v2437_v18 = vor.u32 %v3312_v16, %v2436_v15  ;;  %v2564_v19 = vld [vmem:[#allocation3 + $0x2c0] sm:$0xf]  ;;  %v3344_v20 = vld [vmem:[#allocation3 + $0x2cc] sm:$0xf0]  ;;  %1318 = vmatpush.bf16.msra.mxu3 %v2709_v13 }
  0x15   :  { %v2692_v21 = vld [vmem:[#allocation3 + $0x3c0] sm:$0xf]  ;;  %v2565_v22 = vor.u32 %v3344_v20, %v2564_v19  ;;  %v3376_v23 = vld [vmem:[#allocation3 + $0x3cc] sm:$0xf0]  ;;  %1280 = vmatpush.bf16.msra.mxu0 %v2309_v17 }
  0x16   :  { %v2292_v24 = vld [vmem:[#allocation3 + $0xa0] sm:$0xf]  ;;  %v3276_v25 = vld [vmem:[#allocation3 + $0xac] sm:$0xf0]  ;;  %v2693_v26 = vor.u32 %v3376_v23, %v2692_v21  ;;  %1293 = vmatpush.bf16.msra.mxu1 %v2437_v18 }
  0x17   :  { %v2420_v27 = vld [vmem:[#allocation3 + $0x1a0] sm:$0xf]  ;;  %v3308_v28 = vld [vmem:[#allocation3 + $0x1ac] sm:$0xf0]  ;;  %v2293_v30 = vor.u32 %v3276_v25, %v2292_v24  ;;  %1306 = vmatpush.bf16.msra.mxu2 %v2565_v22  ;;  %v61_v22 = vld [vmem:[%s3720_s0] sm:$0xff] }
  0x18   :  { %v2548_v29 = vld [vmem:[#allocation3 + $0x2a0] sm:$0xf]  ;;  %v3340_v31 = vld [vmem:[#allocation3 + $0x2ac] sm:$0xf0]  ;;  %v2421_v34 = vor.u32 %v3308_v28, %v2420_v27  ;;  %1319 = vmatpush.bf16.msra.mxu3 %v2693_v26  ;;  %65 = vst [vmem:[#allocation1] ss:$4 sm:$0xff] %v61_v22 }
  0x19   :  { %v2676_v32 = vld [vmem:[#allocation3 + $0x3a0] sm:$0xf]  ;;  %v3372_v33 = vld [vmem:[#allocation3 + $0x3ac] sm:$0xf0]  ;;  %v2549_v35 = vor.u32 %v3340_v31, %v2548_v29  ;;  %1281 = vmatpush.bf16.msra.mxu0 %v2293_v30  ;;  %v3302_v22 = vld [vmem:[#allocation3 + $0x184] sm:$0xf] }
  0x1a   :  { %v2276_v36 = vld [vmem:[#allocation3 + $0x80] sm:$0xf]  ;;  %v3272_v37 = vld [vmem:[#allocation3 + $0x8c] sm:$0xf0]  ;;  %v2677_v39 = vor.u32 %v3372_v33, %v2676_v32  ;;  %1294 = vmatpush.bf16.msra.mxu1 %v2421_v34 }
  0x1b   :  { %v2404_v38 = vld [vmem:[#allocation3 + $0x180] sm:$0xf]  ;;  %v3304_v40 = vld [vmem:[#allocation3 + $0x18c] sm:$0xf0]  ;;  %v2277_v45 = vor.u32 %v3272_v37, %v2276_v36  ;;  %1307 = vmatpush.bf16.msra.mxu2 %v2549_v35  ;;  %v3282_v35 = vld [vmem:[#allocation3 + $0xe4] sm:$0xf] }
  0x1c   :  { %v2532_v41 = vld [vmem:[#allocation3 + $0x280] sm:$0xf]  ;;  %v3336_v42 = vld [vmem:[#allocation3 + $0x28c] sm:$0xf0]  ;;  %v2405_v46 = vor.u32 %v3304_v40, %v2404_v38  ;;  %1320 = vmatpush.bf16.msra.mxu3 %v2677_v39  ;;  %v2326_v36 = vld [vmem:[#allocation3 + $0xf0] sm:$0xf0] }
  0x1d   :  { %v2660_v43 = vld [vmem:[#allocation3 + $0x380] sm:$0xf]  ;;  %v3368_v44 = vld [vmem:[#allocation3 + $0x38c] sm:$0xf0]  ;;  %v2533_v47 = vor.u32 %v3336_v42, %v2532_v41  ;;  %1282 = vmatpush.bf16.msra.mxu0 %v2277_v45  ;;  %v3314_v41 = vld [vmem:[#allocation3 + $0x1e4] sm:$0xf] }
  0x1e   :  { %v2260_v48 = vld [vmem:[#allocation3 + $0x60] sm:$0xf]  ;;  %v3268_v49 = vld [vmem:[#allocation3 + $0x6c] sm:$0xf0]  ;;  %v2661_v51 = vor.u32 %v3368_v44, %v2660_v43  ;;  %1295 = vmatpush.bf16.msra.mxu1 %v2405_v46  ;;  %v2454_v42 = vld [vmem:[#allocation3 + $0x1f0] sm:$0xf0] }
  0x1f   :  { %v2388_v50 = vld [vmem:[#allocation3 + $0x160] sm:$0xf]  ;;  %v3300_v52 = vld [vmem:[#allocation3 + $0x16c] sm:$0xf0]  ;;  %v2261_v57 = vor.u32 %v3268_v49, %v2260_v48  ;;  %1308 = vmatpush.bf16.msra.mxu2 %v2533_v47  ;;  %v2329_v49 = vor.u32 %v3282_v35, %v2326_v36 }
  0x20   :  { %v2516_v53 = vld [vmem:[#allocation3 + $0x260] sm:$0xf]  ;;  %v3332_v54 = vld [vmem:[#allocation3 + $0x26c] sm:$0xf0]  ;;  %v2389_v58 = vor.u32 %v3300_v52, %v2388_v50  ;;  %1321 = vmatpush.bf16.msra.mxu3 %v2661_v51  ;;  %v3278_v51 = vld [vmem:[#allocation3 + $0xc4] sm:$0xf] }
  0x21   :  { %v2644_v55 = vld [vmem:[#allocation3 + $0x360] sm:$0xf]  ;;  %v3364_v56 = vld [vmem:[#allocation3 + $0x36c] sm:$0xf0]  ;;  %v2517_v59 = vor.u32 %v3332_v54, %v2516_v53  ;;  %1283 = vmatpush.bf16.msra.mxu0 %v2261_v57  ;;  %v2310_v52 = vld [vmem:[#allocation3 + $0xd0] sm:$0xf0] }
  0x22   :  { %v2244_v60 = vld [vmem:[#allocation3 + $0x40] sm:$0xf]  ;;  %v3264_v61 = vld [vmem:[#allocation3 + $0x4c] sm:$0xf0]  ;;  %v2645_v63 = vor.u32 %v3364_v56, %v2644_v55  ;;  %1296 = vmatpush.bf16.msra.mxu1 %v2389_v58 }
  0x23   :  { %v2372_v62 = vld [vmem:[#allocation3 + $0x140] sm:$0xf]  ;;  %v3296_v0 = vld [vmem:[#allocation3 + $0x14c] sm:$0xf0]  ;;  %v2245_v5 = vor.u32 %v3264_v61, %v2244_v60  ;;  %1309 = vmatpush.bf16.msra.mxu2 %v2517_v59  ;;  %v2457_v60 = vor.u32 %v3314_v41, %v2454_v42 }
  0x24   :  { %v2500_v1 = vld [vmem:[#allocation3 + $0x240] sm:$0xf]  ;;  %v3328_v2 = vld [vmem:[#allocation3 + $0x24c] sm:$0xf0]  ;;  %v2373_v7 = vor.u32 %v3296_v0, %v2372_v62  ;;  %1322 = vmatpush.bf16.msra.mxu3 %v2645_v63  ;;  %v3310_v62 = vld [vmem:[#allocation3 + $0x1c4] sm:$0xf] }
  0x25   :  { %v2628_v3 = vld [vmem:[#allocation3 + $0x340] sm:$0xf]  ;;  %v3360_v4 = vld [vmem:[#allocation3 + $0x34c] sm:$0xf0]  ;;  %v2501_v8 = vor.u32 %v3328_v2, %v2500_v1  ;;  %1284 = vmatpush.bf16.msra.mxu0 %v2245_v5  ;;  %v2438_v63 = vld [vmem:[#allocation3 + $0x1d0] sm:$0xf0]  ;;  %v2313_v2 = vor.u32 %v3278_v51, %v2310_v52 }
  0x26   :  { %v2228_v6 = vld [vmem:[#allocation3 + $0x20] sm:$0xf]  ;;  %v3260_v9 = vld [vmem:[#allocation3 + $0x2c] sm:$0xf0]  ;;  %v2629_v12 = vor.u32 %v3360_v4, %v2628_v3  ;;  %1297 = vmatpush.bf16.msra.mxu1 %v2373_v7  ;;  %v3274_v7 = vld [vmem:[#allocation3 + $0xa4] sm:$0xf] }
  0x27   :  { %v2356_v10 = vld [vmem:[#allocation3 + $0x120] sm:$0xf]  ;;  %v3292_v11 = vld [vmem:[#allocation3 + $0x12c] sm:$0xf0]  ;;  %v2229_v19 = vor.u32 %v3260_v9, %v2228_v6  ;;  %1310 = vmatpush.bf16.msra.mxu2 %v2501_v8  ;;  %v2294_v8 = vld [vmem:[#allocation3 + $0xb0] sm:$0xf0] }
  0x28   :  { %v2484_v13 = vld [vmem:[#allocation3 + $0x220] sm:$0xf]  ;;  %v3324_v14 = vld [vmem:[#allocation3 + $0x22c] sm:$0xf0]  ;;  %v2357_v23 = vor.u32 %v3292_v11, %v2356_v10  ;;  %1323 = vmatpush.bf16.msra.mxu3 %v2629_v12  ;;  %v2441_v10 = vor.u32 %v3310_v62, %v2438_v63  ;;  %v3306_v12 = vld [vmem:[#allocation3 + $0x1a4] sm:$0xf] }
  0x29   :  { %v2612_v15 = vld [vmem:[#allocation3 + $0x320] sm:$0xf]  ;;  %v3356_v16 = vld [vmem:[#allocation3 + $0x32c] sm:$0xf0]  ;;  %v2485_v24 = vor.u32 %v3324_v14, %v2484_v13  ;;  %1285 = vmatpush.bf16.msra.mxu0 %v2229_v19  ;;  %v2422_v13 = vld [vmem:[#allocation3 + $0x1b0] sm:$0xf0] }
  0x2a   :  { %v2212_v17 = vld [vmem:[#allocation3] sm:$0xf]  ;;  %v3256_v18 = vld [vmem:[#allocation3 + $0xc] sm:$0xf0]  ;;  %v2613_v27 = vor.u32 %v3356_v16, %v2612_v15  ;;  %1298 = vmatpush.bf16.msra.mxu1 %v2357_v23  ;;  %v2297_v15 = vor.u32 %v3274_v7, %v2294_v8  ;;  %v2425_v23 = vor.u32 %v3306_v12, %v2422_v13  ;;  %v3290_v63 = vld [vmem:[#allocation3 + $0x124] sm:$0xf] }
  0x2b   :  { %v2340_v20 = vld [vmem:[#allocation3 + $0x100] sm:$0xf]  ;;  %v3288_v21 = vld [vmem:[#allocation3 + $0x10c] sm:$0xf0]  ;;  %v2213_v34 = vor.u32 %v3256_v18, %v2212_v17  ;;  %1311 = vmatpush.bf16.msra.mxu2 %v2485_v24  ;;  %v2214_v12 = vld [vmem:[#allocation3 + $0x10] sm:$0xf0] }
  0x2c   :  { %v2468_v25 = vld [vmem:[#allocation3 + $0x200] sm:$0xf]  ;;  %v3320_v26 = vld [vmem:[#allocation3 + $0x20c] sm:$0xf0]  ;;  %v2341_v38 = vor.u32 %v3288_v21, %v2340_v20  ;;  %1324 = vmatpush.bf16.msra.mxu3 %v2613_v27  ;;  %v3270_v20 = vld [vmem:[#allocation3 + $0x84] sm:$0xf] }
  0x2d   :  { %v2596_v28 = vld [vmem:[#allocation3 + $0x300] sm:$0xf]  ;;  %v3352_v29 = vld [vmem:[#allocation3 + $0x30c] sm:$0xf0]  ;;  %v2469_v39 = vor.u32 %v3320_v26, %v2468_v25  ;;  %1286 = vmatpush.bf16.msra.mxu0 %v2213_v34  ;;  %v2278_v21 = vld [vmem:[#allocation3 + $0x90] sm:$0xf0] }
  0x2e   :  { %v2836_v30 = vld [vmem:[#allocation3 + $0x4e0] sm:$0xf]  ;;  %v3412_v31 = vld [vmem:[#allocation3 + $0x4ec] sm:$0xf0]  ;;  %v2597_v43 = vor.u32 %v3352_v29, %v2596_v28  ;;  %1299 = vmatpush.bf16.msra.mxu1 %v2341_v38  ;;  %v2406_v25 = vld [vmem:[#allocation3 + $0x190] sm:$0xf0]  ;;  %v2281_v29 = vor.u32 %v3270_v20, %v2278_v21 }
  0x2f   :  { %v2964_v32 = vld [vmem:[#allocation3 + $0x5e0] sm:$0xf]  ;;  %v3444_v33 = vld [vmem:[#allocation3 + $0x5ec] sm:$0xf0]  ;;  %v2837_v44 = vor.u32 %v3412_v31, %v2836_v30  ;;  %1312 = vmatpush.bf16.msra.mxu2 %v2469_v39  ;;  %v2262_v34 = vld [vmem:[#allocation3 + $0x70] sm:$0xf0]  ;;  %v2409_v35 = vor.u32 %v3302_v22, %v2406_v25 }
  0x30   :  { %v2980_v37 = vld [vmem:[#allocation3 + $0x600] sm:$0xf]  ;;  %v3448_v40 = vld [vmem:[#allocation3 + $0x60c] sm:$0xf0]  ;;  %v2965_v48 = vor.u32 %v3444_v33, %v2964_v32  ;;  %1325 = vmatpush.bf16.msra.mxu3 %v2597_v43  ;;  %v3266_v33 = vld [vmem:[#allocation3 + $0x64] sm:$0xf] }
  0x31   :  { %v2820_v45 = vld [vmem:[#allocation3 + $0x4c0] sm:$0xf]  ;;  %v3408_v46 = vld [vmem:[#allocation3 + $0x4cc] sm:$0xf0]  ;;  %v2981_v56 = vor.u32 %v3448_v40, %v2980_v37  ;;  %1331 = vmatpush.bf16.msrb.mxu0 %v2837_v44  ;;  %v3298_v37 = vld [vmem:[#allocation3 + $0x164] sm:$0xf]  ;;  %v2265_v40 = vor.u32 %v3266_v33, %v2262_v34 }
  0x32   :  { %v2948_v47 = vld [vmem:[#allocation3 + $0x5c0] sm:$0xf]  ;;  %v3440_v50 = vld [vmem:[#allocation3 + $0x5cc] sm:$0xf0]  ;;  %v2821_v61 = vor.u32 %v3408_v46, %v2820_v45  ;;  %1344 = vmatpush.bf16.msrb.mxu1 %v2965_v48  ;;  %v2390_v38 = vld [vmem:[#allocation3 + $0x170] sm:$0xf0] }
  0x33   :  { %v70_v53 = vld.sshfl [vmem:[#allocation1 + $0x10] sm:$0xff pattern:$0x73625140]  ;;  %v68_v54 = vld.sshfl [vmem:[#allocation1] sm:$0xff pattern:$0x73625140]  ;;  %v2949_v1 = vor.u32 %v3440_v50, %v2948_v47  ;;  %1364 = vmatpush.bf16.msrb.mxu2 %v2981_v56  ;;  %v2393_v48 = vor.u32 %v3298_v37, %v2390_v38 }
  0x34   :  { %v3634_v55 = vpack.c.bf16 %v70_v53, %v70_v53  ;;  %v3636_v57 = vpack.c.bf16 %v68_v54, %v68_v54  ;;  %v71_v58 = vld.sshfl [vmem:[#allocation1 + $0x18] sm:$0xff pattern:$0x73625140]  ;;  %v69_v59 = vld.sshfl [vmem:[#allocation1 + $0x8] sm:$0xff pattern:$0x73625140]  ;;  %1370 = vmatpush.bf16.msrb.mxu3 %v2329_v49 }
  0x35   :  { %v3638_v0 = vpack.c.bf16 %v71_v58, %v71_v58  ;;  %v2804_v3 = vld [vmem:[#allocation3 + $0x4a0] sm:$0xf]  ;;  %v3404_v4 = vld [vmem:[#allocation3 + $0x4ac] sm:$0xf0]  ;;  %v3642_v9 = vpack.c.bf16 %v69_v59, %v69_v59  ;;  %1332 = vmatpush.bf16.msrb.mxu0 %v2821_v61  ;;  %v3262_v45 = vld [vmem:[#allocation3 + $0x44] sm:$0xf] }
  0x36   :  { %v2932_v5 = vld [vmem:[#allocation3 + $0x5a0] sm:$0xf]  ;;  %1313 = vmatmul.bf16.vlgmr.msra.gmra.mxu2 %v3634_v55  ;;  %1287 = vmatmul.bf16.vlgmr.msra.gmra.mxu0 %v3636_v57  ;;  %v3436_v6 = vld [vmem:[#allocation3 + $0x5ac] sm:$0xf0]  ;;  %v2805_v11 = vor.u32 %v3404_v4, %v2804_v3  ;;  %v2246_v46 = vld [vmem:[#allocation3 + $0x50] sm:$0xf0] }
  0x37   :  { %1326 = vmatmul.bf16.vlgmr.msra.gmra.mxu3 %v3638_v0  ;;  %1383 = vmatpush.bf16.msra.mxu2 %v2457_v60  ;;  %v2933_v14 = vor.u32 %v3436_v6, %v2932_v5  ;;  %v2788_v16 = vld [vmem:[#allocation3 + $0x480] sm:$0xf]  ;;  %v3400_v17 = vld [vmem:[#allocation3 + $0x48c] sm:$0xf0]  ;;  %v3294_v47 = vld [vmem:[#allocation3 + $0x144] sm:$0xf]  ;;  %v2249_v54 = vor.u32 %v3262_v45, %v2246_v46 }
  0x38   :  { %1345 = vmatpush.bf16.msrb.mxu1 %v2949_v1  ;;  %1371 = vmatpush.bf16.msrb.mxu3 %v2313_v2  ;;  %v2916_v18 = vld [vmem:[#allocation3 + $0x580] sm:$0xf]  ;;  %v3432_v19 = vld [vmem:[#allocation3 + $0x58c] sm:$0xf0]  ;;  %v2789_v24 = vor.u32 %v3400_v17, %v2788_v16  ;;  %v2374_v50 = vld [vmem:[#allocation3 + $0x150] sm:$0xf0] }
  0x39   :  { %1300 = vmatmul.bf16.vlgmr.msra.gmra.mxu1 %v3642_v9  ;;  %1333 = vmatpush.bf16.msrb.mxu0 %v2805_v11  ;;  %v2772_v26 = vld [vmem:[#allocation3 + $0x460] sm:$0xf]  ;;  %v3396_v27 = vld [vmem:[#allocation3 + $0x46c] sm:$0xf0]  ;;  %v2917_v28 = vor.u32 %v3432_v19, %v2916_v18  ;;  %v3258_v60 = vld [vmem:[#allocation3 + $0x24] sm:$0xf]  ;;  %v2377_v2 = vor.u32 %v3294_v47, %v2374_v50 }
  0x3a   :  { %v2900_v30 = vld [vmem:[#allocation3 + $0x560] sm:$0xf]  ;;  %v3428_v31 = vld [vmem:[#allocation3 + $0x56c] sm:$0xf0]  ;;  %v2773_v36 = vor.u32 %v3396_v27, %v2772_v26  ;;  %v2230_v61 = vld [vmem:[#allocation3 + $0x30] sm:$0xf0] }
  0x3b   :  { %1384 = vmatpush.bf16.msra.mxu2 %v2441_v10  ;;  %v62_v32 = vld [vmem:[%s3720_s0 + $0x8] sm:$0x3f]  ;;  %v2901_v39 = vor.u32 %v3428_v31, %v2900_v30  ;;  %v3392_v42 = vld [vmem:[#allocation3 + $0x44c] sm:$0xf0]  ;;  %v2358_v1 = vld [vmem:[#allocation3 + $0x130] sm:$0xf0]  ;;  %v2233_v8 = vor.u32 %v3258_v60, %v2230_v61 }
  0x3c   :  { %1346 = vmatpush.bf16.msrb.mxu1 %v2933_v14  ;;  %1372 = vmatpush.bf16.msrb.mxu3 %v2297_v15  ;;  %67 = vst [vmem:[#allocation1 + $0x20] ss:$4 sm:$0xff] %v62_v32  ;;  %v2756_v41 = vld [vmem:[#allocation3 + $0x440] sm:$0xf]  ;;  %v3424_v44 = vld [vmem:[#allocation3 + $0x54c] sm:$0xf0]  ;;  %v2361_v19 = vor.u32 %v3290_v63, %v2358_v1 }
  0x3d   :  { %1334 = vmatpush.bf16.msrb.mxu0 %v2789_v24  ;;  %v2884_v43 = vld [vmem:[#allocation3 + $0x540] sm:$0xf]  ;;  %v2757_v49 = vor.u32 %v3392_v42, %v2756_v41  ;;  %v3388_v52 = vld [vmem:[#allocation3 + $0x42c] sm:$0xf0]  ;;  %v3254_v11 = vld [vmem:[#allocation3 + $0x4] sm:$0xf] }
  0x3e   :  { %v2740_v51 = vld [vmem:[#allocation3 + $0x420] sm:$0xf]  ;;  %v2885_v53 = vor.u32 %v3424_v44, %v2884_v43  ;;  %v3420_v59 = vld [vmem:[#allocation3 + $0x52c] sm:$0xf0]  ;;  %v3346_v13 = vld [vmem:[#allocation3 + $0x2e4] sm:$0xf]  ;;  %v2217_v24 = vor.u32 %v3254_v11, %v2214_v12 }
  0x3f   :  { %1385 = vmatpush.bf16.msra.mxu2 %v2425_v23  ;;  %v2868_v56 = vld [vmem:[#allocation3 + $0x520] sm:$0xf]  ;;  %v2741_v3 = vor.u32 %v3388_v52, %v2740_v51  ;;  %v3384_v5 = vld [vmem:[#allocation3 + $0x40c] sm:$0xf0]  ;;  %v2582_v14 = vld [vmem:[#allocation3 + $0x2f0] sm:$0xf0] }
  0x40   :  { %1347 = vmatpush.bf16.msrb.mxu1 %v2917_v28  ;;  %1373 = vmatpush.bf16.msrb.mxu3 %v2281_v29  ;;  %v2724_v4 = vld [vmem:[#allocation3 + $0x400] sm:$0xf]  ;;  %v2869_v7 = vor.u32 %v3420_v59, %v2868_v56  ;;  %v3416_v10 = vld [vmem:[#allocation3 + $0x50c] sm:$0xf0]  ;;  %v3378_v15 = vld [vmem:[#allocation3 + $0x3e4] sm:$0xf]  ;;  %v2585_v27 = vor.u32 %v3346_v13, %v2582_v14 }
  0x41   :  { %1335 = vmatpush.bf16.msrb.mxu0 %v2773_v36  ;;  %v2852_v6 = vld [vmem:[#allocation3 + $0x500] sm:$0xf]  ;;  %v2710_v16 = vld [vmem:[#allocation3 + $0x3f0] sm:$0xf0]  ;;  %v3410_v17 = vld [vmem:[#allocation3 + $0x4e4] sm:$0xf]  ;;  %v2725_v20 = vor.u32 %v3384_v5, %v2724_v4 }
  0x42   :  { %v2838_v18 = vld [vmem:[#allocation3 + $0x4f0] sm:$0xf0]  ;;  %v3286_v22 = vld [vmem:[#allocation3 + $0x104] sm:$0xf]  ;;  %v2853_v23 = vor.u32 %v3416_v10, %v2852_v6  ;;  %v2713_v28 = vor.u32 %v3378_v15, %v2710_v16 }
  0x43   :  { %1386 = vmatpush.bf16.msra.mxu2 %v2409_v35  ;;  %v74_v58 = vld.sshfl [vmem:[#allocation1 + $0x30] sm:$0xff pattern:$0x73625140]  ;;  %v72_v21 = vld.sshfl [vmem:[#allocation1 + $0x20] sm:$0xff pattern:$0x73625140]  ;;  %v2841_v32 = vor.u32 %v3410_v17, %v2838_v18 }
  0x44   :  { %1348 = vmatpush.bf16.msrb.mxu1 %v2901_v39  ;;  %1374 = vmatpush.bf16.msrb.mxu3 %v2265_v40  ;;  %v3649_v62 = vpack.c.bf16 %v74_v58, %v74_v58  ;;  %v2342_v25 = vld [vmem:[#allocation3 + $0x110] sm:$0xf0]  ;;  %v73_v26 = vld.sshfl [vmem:[#allocation1 + $0x28] sm:$0xff pattern:$0x73625140]  ;;  %v3653_v33 = vpack.c.bf16 %v72_v21, %v72_v21 }
  0x45   :  { %1336 = vmatpush.bf16.msrb.mxu0 %v2757_v49  ;;  %v3442_v29 = vld [vmem:[#allocation3 + $0x5e4] sm:$0xf]  ;;  %v2966_v30 = vld [vmem:[#allocation3 + $0x5f0] sm:$0xf0]  ;;  %v2345_v37 = vor.u32 %v3286_v22, %v2342_v25  ;;  %v3655_v38 = vpack.c.bf16 %v73_v26, %v73_v26 }
  0x46   :  { %2994 = vmatmul.msk.bf16.vlgmr.msrb.gmra.mxu2 %vm1275_vm0, %v3649_v62  ;;  %v3342_v31 = vld [vmem:[#allocation3 + $0x2c4] sm:$0xf]  ;;  %v2566_v34 = vld [vmem:[#allocation3 + $0x2d0] sm:$0xf0]  ;;  %v2969_v41 = vor.u32 %v3442_v29, %v2966_v30 }
  0x47   :  { %1387 = vmatpush.bf16.msra.mxu2 %v2393_v48  ;;  %v3374_v35 = vld [vmem:[#allocation3 + $0x3c4] sm:$0xf]  ;;  %v2694_v36 = vld [vmem:[#allocation3 + $0x3d0] sm:$0xf0]  ;;  %v2569_v42 = vor.u32 %v3342_v31, %v2566_v34 }
  0x48   :  { %1349 = vmatpush.bf16.msrb.mxu1 %v2885_v53  ;;  %1375 = vmatpush.bf16.msrb.mxu3 %v2249_v54  ;;  %v3406_v39 = vld [vmem:[#allocation3 + $0x4c4] sm:$0xf]  ;;  %v2822_v40 = vld [vmem:[#allocation3 + $0x4d0] sm:$0xf0]  ;;  %v2697_v43 = vor.u32 %v3374_v35, %v2694_v36 }
  0x49   :  { %1337 = vmatpush.bf16.msrb.mxu0 %v2741_v3  ;;  %v3438_v44 = vld [vmem:[#allocation3 + $0x5c4] sm:$0xf]  ;;  %v2950_v45 = vld [vmem:[#allocation3 + $0x5d0] sm:$0xf0]  ;;  %v2825_v47 = vor.u32 %v3406_v39, %v2822_v40 }
  0x4a   :  { %v3338_v46 = vld [vmem:[#allocation3 + $0x2a4] sm:$0xf]  ;;  %v2550_v48 = vld [vmem:[#allocation3 + $0x2b0] sm:$0xf0]  ;;  %v2953_v53 = vor.u32 %v3438_v44, %v2950_v45 }
  0x4b   :  { %1388 = vmatpush.bf16.msra.mxu2 %v2377_v2  ;;  %v3370_v49 = vld [vmem:[#allocation3 + $0x3a4] sm:$0xf]  ;;  %v2678_v50 = vld [vmem:[#allocation3 + $0x3b0] sm:$0xf0]  ;;  %v2553_v54 = vor.u32 %v3338_v46, %v2550_v48 }
  0x4c   :  { %1350 = vmatpush.bf16.msrb.mxu1 %v2869_v7  ;;  %1376 = vmatpush.bf16.msrb.mxu3 %v2233_v8  ;;  %v3402_v51 = vld [vmem:[#allocation3 + $0x4a4] sm:$0xf]  ;;  %v2806_v52 = vld [vmem:[#allocation3 + $0x4b0] sm:$0xf0]  ;;  %v2681_v56 = vor.u32 %v3370_v49, %v2678_v50 }
  0x4d   :  { %1338 = vmatpush.bf16.msrb.mxu0 %v2725_v20  ;;  %v3434_v58 = vld [vmem:[#allocation3 + $0x5a4] sm:$0xf]  ;;  %v2934_v59 = vld [vmem:[#allocation3 + $0x5b0] sm:$0xf0]  ;;  %v2809_v61 = vor.u32 %v3402_v51, %v2806_v52 }
  0x4e   :  { %v3334_v60 = vld [vmem:[#allocation3 + $0x284] sm:$0xf]  ;;  %v2534_v63 = vld [vmem:[#allocation3 + $0x290] sm:$0xf0]  ;;  %v2937_v5 = vor.u32 %v3434_v58, %v2934_v59  ;;  %v2332_v58 = vld [vmem:[#allocation3 + $0xe8] sm:$0xf] }
  0x4f   :  { %1389 = vmatpush.bf16.msra.mxu2 %v2361_v19  ;;  %v3366_v1 = vld [vmem:[#allocation3 + $0x384] sm:$0xf]  ;;  %v2662_v2 = vld [vmem:[#allocation3 + $0x390] sm:$0xf0]  ;;  %v2537_v6 = vor.u32 %v3334_v60, %v2534_v63  ;;  %v3285_v59 = vld [vmem:[#allocation3 + $0xf4] sm:$0xf0] }
  0x50   :  { %1351 = vmatpush.bf16.msrb.mxu1 %v2853_v23  ;;  %1377 = vmatpush.bf16.msrb.mxu3 %v2217_v24  ;;  %v3398_v3 = vld [vmem:[#allocation3 + $0x484] sm:$0xf]  ;;  %v2790_v4 = vld [vmem:[#allocation3 + $0x490] sm:$0xf0]  ;;  %v2665_v7 = vor.u32 %v3366_v1, %v2662_v2  ;;  %v2460_v60 = vld [vmem:[#allocation3 + $0x1e8] sm:$0xf] }
  0x51   :  { %1396 = vmatpush.bf16.msra.mxu0 %v2585_v27  ;;  %v3430_v8 = vld [vmem:[#allocation3 + $0x584] sm:$0xf]  ;;  %v2918_v10 = vld [vmem:[#allocation3 + $0x590] sm:$0xf0]  ;;  %v2793_v12 = vor.u32 %v3398_v3, %v2790_v4  ;;  %v3317_v63 = vld [vmem:[#allocation3 + $0x1f4] sm:$0xf0] }
  0x52   :  { %1339 = vmatmul.bf16.vlgmr.msrb.gmra.mxu0 %v3653_v33  ;;  %v3330_v11 = vld [vmem:[#allocation3 + $0x264] sm:$0xf]  ;;  %v2518_v13 = vld [vmem:[#allocation3 + $0x270] sm:$0xf0]  ;;  %v2921_v18 = vor.u32 %v3430_v8, %v2918_v10  ;;  %v2333_v10 = vor.u32 %v3285_v59, %v2332_v58  ;;  %v3269_v58 = vld [vmem:[#allocation3 + $0x74] sm:$0xf0] }
  0x53   :  { %1390 = vmatpush.bf16.msra.mxu2 %v2345_v37  ;;  %1352 = vmatmul.bf16.vlgmr.msrb.gmra.mxu1 %v3655_v38  ;;  %v3362_v14 = vld [vmem:[#allocation3 + $0x364] sm:$0xf]  ;;  %v2646_v15 = vld [vmem:[#allocation3 + $0x370] sm:$0xf0]  ;;  %v2521_v19 = vor.u32 %v3330_v11, %v2518_v13  ;;  %v3349_v11 = vld [vmem:[#allocation3 + $0x2f4] sm:$0xf0] }
  0x54   :  { %1409 = vmatpush.bf16.msra.mxu1 %v2713_v28  ;;  %1422 = vmatpush.bf16.msra.mxu3 %v2841_v32  ;;  %v3394_v16 = vld [vmem:[#allocation3 + $0x464] sm:$0xf]  ;;  %v2774_v17 = vld [vmem:[#allocation3 + $0x470] sm:$0xf0]  ;;  %v2649_v20 = vor.u32 %v3362_v14, %v2646_v15  ;;  %v3381_v13 = vld [vmem:[#allocation3 + $0x3f4] sm:$0xf0]  ;;  %v2461_v14 = vor.u32 %v3317_v63, %v2460_v60 }
  0x55   :  { %1378 = vmatmul.bf16.vlgmr.msrb.gmra.mxu3 %v3636_v57  ;;  %1397 = vmatpush.bf16.msra.mxu0 %v2569_v42  ;;  %v3426_v21 = vld [vmem:[#allocation3 + $0x564] sm:$0xf]  ;;  %v2902_v22 = vld [vmem:[#allocation3 + $0x570] sm:$0xf0]  ;;  %v2777_v24 = vor.u32 %v3394_v16, %v2774_v17  ;;  %v2316_v16 = vld [vmem:[#allocation3 + $0xc8] sm:$0xf] }
  0x56   :  { %1391 = vmatmul.bf16.vlgmr.msra.gmra.mxu2 %v3642_v9  ;;  %v3326_v23 = vld [vmem:[#allocation3 + $0x244] sm:$0xf]  ;;  %v2502_v25 = vld [vmem:[#allocation3 + $0x250] sm:$0xf0]  ;;  %v2905_v30 = vor.u32 %v3426_v21, %v2902_v22  ;;  %v3281_v17 = vld [vmem:[#allocation3 + $0xd4] sm:$0xf0] }
  0x57   :  { %1435 = vmatpush.bf16.msrb.mxu2 %v2969_v41  ;;  %v3358_v26 = vld [vmem:[#allocation3 + $0x344] sm:$0xf]  ;;  %v2630_v27 = vld [vmem:[#allocation3 + $0x350] sm:$0xf0]  ;;  %v2505_v31 = vor.u32 %v3326_v23, %v2502_v25  ;;  %v2572_v23 = vld [vmem:[#allocation3 + $0x2c8] sm:$0xf] }
  0x58   :  { %1410 = vmatpush.bf16.msra.mxu1 %v2697_v43  ;;  %1423 = vmatpush.bf16.msra.mxu3 %v2825_v47  ;;  %v3390_v28 = vld [vmem:[#allocation3 + $0x444] sm:$0xf]  ;;  %v2758_v29 = vld [vmem:[#allocation3 + $0x450] sm:$0xf0]  ;;  %v2633_v32 = vor.u32 %v3358_v26, %v2630_v27  ;;  %v3345_v25 = vld [vmem:[#allocation3 + $0x2d4] sm:$0xf0] }
  0x59   :  { %1398 = vmatpush.bf16.msra.mxu0 %v2553_v54  ;;  %v3422_v34 = vld [vmem:[#allocation3 + $0x544] sm:$0xf]  ;;  %v2886_v35 = vld [vmem:[#allocation3 + $0x550] sm:$0xf0]  ;;  %v2761_v37 = vor.u32 %v3390_v28, %v2758_v29  ;;  %v2700_v26 = vld [vmem:[#allocation3 + $0x3c8] sm:$0xf] }
  0x5a   :  { %v3322_v36 = vld [vmem:[#allocation3 + $0x224] sm:$0xf]  ;;  %v2486_v39 = vld [vmem:[#allocation3 + $0x230] sm:$0xf0]  ;;  %v2889_v44 = vor.u32 %v3422_v34, %v2886_v35  ;;  %v3377_v27 = vld [vmem:[#allocation3 + $0x3d4] sm:$0xf0]  ;;  %v2573_v34 = vor.u32 %v3345_v25, %v2572_v23 }
  0x5b   :  { %1436 = vmatpush.bf16.msrb.mxu2 %v2953_v53  ;;  %v3354_v40 = vld [vmem:[#allocation3 + $0x324] sm:$0xf]  ;;  %v2614_v41 = vld [vmem:[#allocation3 + $0x330] sm:$0xf0]  ;;  %v2489_v47 = vor.u32 %v3322_v36, %v2486_v39  ;;  %v2300_v29 = vld [vmem:[#allocation3 + $0xa8] sm:$0xf]  ;;  %v2701_v35 = vor.u32 %v3377_v27, %v2700_v26 }
  0x5c   :  { %1411 = vmatpush.bf16.msra.mxu1 %v2681_v56  ;;  %1424 = vmatpush.bf16.msra.mxu3 %v2809_v61  ;;  %v3386_v42 = vld [vmem:[#allocation3 + $0x424] sm:$0xf]  ;;  %v2742_v43 = vld [vmem:[#allocation3 + $0x430] sm:$0xf0]  ;;  %v2617_v48 = vor.u32 %v3354_v40, %v2614_v41  ;;  %v2556_v36 = vld [vmem:[#allocation3 + $0x2a8] sm:$0xf] }
  0x5d   :  { %1399 = vmatpush.bf16.msra.mxu0 %v2537_v6  ;;  %v3418_v45 = vld [vmem:[#allocation3 + $0x524] sm:$0xf]  ;;  %v2870_v46 = vld [vmem:[#allocation3 + $0x530] sm:$0xf0]  ;;  %v2745_v52 = vor.u32 %v3386_v42, %v2742_v43  ;;  %v3341_v39 = vld [vmem:[#allocation3 + $0x2b4] sm:$0xf0] }
  0x5e   :  { %v3318_v49 = vld [vmem:[#allocation3 + $0x204] sm:$0xf]  ;;  %v2470_v50 = vld [vmem:[#allocation3 + $0x210] sm:$0xf0]  ;;  %v2873_v61 = vor.u32 %v3418_v45, %v2870_v46  ;;  %v2684_v40 = vld [vmem:[#allocation3 + $0x3a8] sm:$0xf] }
  0x5f   :  { %1437 = vmatpush.bf16.msrb.mxu2 %v2937_v5  ;;  %v3350_v51 = vld [vmem:[#allocation3 + $0x304] sm:$0xf]  ;;  %v2598_v53 = vld [vmem:[#allocation3 + $0x310] sm:$0xf0]  ;;  %v2473_v3 = vor.u32 %v3318_v49, %v2470_v50  ;;  %v3373_v41 = vld [vmem:[#allocation3 + $0x3b4] sm:$0xf0] }
  0x60   :  { %1412 = vmatpush.bf16.msra.mxu1 %v2665_v7  ;;  %1425 = vmatpush.bf16.msra.mxu3 %v2793_v12  ;;  %v3382_v54 = vld [vmem:[#allocation3 + $0x404] sm:$0xf]  ;;  %v2726_v56 = vld [vmem:[#allocation3 + $0x410] sm:$0xf0]  ;;  %v2601_v4 = vor.u32 %v3350_v51, %v2598_v53  ;;  %v2588_v7 = vld [vmem:[#allocation3 + $0x2e8] sm:$0xf] }
  0x61   :  { %1400 = vmatpush.bf16.msra.mxu0 %v2521_v19  ;;  %v3446_v1 = vld [vmem:[#allocation3 + $0x604] sm:$0xf]  ;;  %v2982_v2 = vld [vmem:[#allocation3 + $0x610] sm:$0xf0]  ;;  %v2729_v8 = vor.u32 %v3382_v54, %v2726_v56  ;;  %v2716_v12 = vld [vmem:[#allocation3 + $0x3e8] sm:$0xf]  ;;  %v2589_v21 = vor.u32 %v3349_v11, %v2588_v7 }
  0x62   :  { %v3414_v5 = vld [vmem:[#allocation3 + $0x504] sm:$0xf]  ;;  %v2854_v6 = vld [vmem:[#allocation3 + $0x510] sm:$0xf0]  ;;  %v2985_v15 = vor.u32 %v3446_v1, %v2982_v2  ;;  %v2444_v19 = vld [vmem:[#allocation3 + $0x1c8] sm:$0xf]  ;;  %v2717_v22 = vor.u32 %v3381_v13, %v2716_v12 }
  0x63   :  { %1438 = vmatpush.bf16.msrb.mxu2 %v2921_v18  ;;  %v2857_v18 = vor.u32 %v3414_v5, %v2854_v6  ;;  %v2284_v43 = vld [vmem:[#allocation3 + $0x88] sm:$0xf]  ;;  %v3305_v46 = vld [vmem:[#allocation3 + $0x194] sm:$0xf0] }
  0x64   :  { %1413 = vmatpush.bf16.msra.mxu1 %v2649_v20  ;;  %1426 = vmatpush.bf16.msra.mxu3 %v2777_v24  ;;  %v3313_v20 = vld [vmem:[#allocation3 + $0x1d4] sm:$0xf0]  ;;  %v2317_v24 = vor.u32 %v3281_v17, %v2316_v16  ;;  %v2412_v45 = vld [vmem:[#allocation3 + $0x188] sm:$0xf] }
  0x65   :  { %1401 = vmatpush.bf16.msra.mxu0 %v2505_v31  ;;  %v2445_v28 = vor.u32 %v3313_v20, %v2444_v19  ;;  %v2428_v31 = vld [vmem:[#allocation3 + $0x1a8] sm:$0xf]  ;;  %v3337_v51 = vld [vmem:[#allocation3 + $0x294] sm:$0xf0]  ;;  %v2413_v54 = vor.u32 %v3305_v46, %v2412_v45 }
  0x66   :  { %v2540_v49 = vld [vmem:[#allocation3 + $0x288] sm:$0xf]  ;;  %v3369_v53 = vld [vmem:[#allocation3 + $0x394] sm:$0xf0] }
  0x67   :  { %1439 = vmatpush.bf16.msrb.mxu2 %v2905_v30  ;;  %v3277_v30 = vld [vmem:[#allocation3 + $0xb4] sm:$0xf0]  ;;  %v2268_v56 = vld [vmem:[#allocation3 + $0x68] sm:$0xf] }
  0x68   :  { %1414 = vmatpush.bf16.msra.mxu1 %v2633_v32  ;;  %1427 = vmatpush.bf16.msra.mxu3 %v2761_v37  ;;  %v3309_v32 = vld [vmem:[#allocation3 + $0x1b4] sm:$0xf0]  ;;  %v2301_v37 = vor.u32 %v3277_v30, %v2300_v29  ;;  %v2396_v59 = vld [vmem:[#allocation3 + $0x168] sm:$0xf]  ;;  %v2269_v2 = vor.u32 %v3269_v58, %v2268_v56 }
  0x69   :  { %1402 = vmatpush.bf16.msra.mxu0 %v2489_v47  ;;  %v2429_v42 = vor.u32 %v3309_v32, %v2428_v31  ;;  %v2557_v47 = vor.u32 %v3341_v39, %v2556_v36  ;;  %v3301_v60 = vld [vmem:[#allocation3 + $0x174] sm:$0xf0]  ;;  %v2524_v1 = vld [vmem:[#allocation3 + $0x268] sm:$0xf] }
  0x6a   :  { %v3365_v5 = vld [vmem:[#allocation3 + $0x374] sm:$0xf0]  ;;  %v2397_v6 = vor.u32 %v3301_v60, %v2396_v59  ;;  %v2252_v7 = vld [vmem:[#allocation3 + $0x48] sm:$0xf] }
  0x6b   :  { %1440 = vmatpush.bf16.msrb.mxu2 %v2889_v44  ;;  %v3273_v44 = vld [vmem:[#allocation3 + $0x94] sm:$0xf0]  ;;  %v2636_v17 = vld [vmem:[#allocation3 + $0x348] sm:$0xf] }
  0x6c   :  { %1415 = vmatpush.bf16.msra.mxu1 %v2617_v48  ;;  %1428 = vmatpush.bf16.msra.mxu3 %v2745_v52  ;;  %v2685_v48 = vor.u32 %v3373_v41, %v2684_v40  ;;  %v2285_v50 = vor.u32 %v3273_v44, %v2284_v43  ;;  %v2668_v52 = vld [vmem:[#allocation3 + $0x388] sm:$0xf]  ;;  %v3297_v11 = vld [vmem:[#allocation3 + $0x154] sm:$0xf0] }
  0x6d   :  { %1403 = vmatpush.bf16.msra.mxu0 %v2473_v3  ;;  %v2669_v63 = vor.u32 %v3369_v53, %v2668_v52  ;;  %v3333_v3 = vld [vmem:[#allocation3 + $0x274] sm:$0xf0]  ;;  %v2236_v20 = vld [vmem:[#allocation3 + $0x28] sm:$0xf]  ;;  %v2334_v52 = vld [vmem:[#allocation3 + $0xf8] sm:$0xf0] }
  0x6e   :  { %v2525_v12 = vor.u32 %v3333_v3, %v2524_v1  ;;  %v3329_v16 = vld [vmem:[#allocation3 + $0x254] sm:$0xf0]  ;;  %v2492_v26 = vld [vmem:[#allocation3 + $0x228] sm:$0xf] }
  0x6f   :  { %1441 = vmatpush.bf16.msrb.mxu2 %v2873_v61  ;;  %v2541_v61 = vor.u32 %v3337_v51, %v2540_v49  ;;  %v3293_v23 = vld [vmem:[#allocation3 + $0x134] sm:$0xf0]  ;;  %v2620_v29 = vld [vmem:[#allocation3 + $0x328] sm:$0xf]  ;;  %v3283_v49 = vld [vmem:[#allocation3 + $0xec] sm:$0xf] }
  0x70   :  { %1416 = vmatpush.bf16.msra.mxu1 %v2601_v4  ;;  %1429 = vmatpush.bf16.msra.mxu3 %v2729_v8  ;;  %v2652_v4 = vld [vmem:[#allocation3 + $0x368] sm:$0xf]  ;;  %v3265_v8 = vld [vmem:[#allocation3 + $0x54] sm:$0xf0] }
  0x71   :  { %1455 = vmatpush.bf16.msrb.mxu0 %v2985_v15  ;;  %v2653_v13 = vor.u32 %v3365_v5, %v2652_v4  ;;  %v2253_v15 = vor.u32 %v3265_v8, %v2252_v7  ;;  %v3325_v27 = vld [vmem:[#allocation3 + $0x234] sm:$0xf0]  ;;  %v2220_v31 = vld [vmem:[#allocation3 + $0x8] sm:$0xf]  ;;  %v3315_v4 = vld [vmem:[#allocation3 + $0x1ec] sm:$0xf] }
  0x72   :  { %1404 = vmatmul.bf16.vlgmr.msra.gmra.mxu0 %v3634_v55  ;;  %v3357_v30 = vld [vmem:[#allocation3 + $0x334] sm:$0xf0]  ;;  %v2972_v40 = vld [vmem:[#allocation3 + $0x5e8] sm:$0xf]  ;;  %v2493_v41 = vor.u32 %v3325_v27, %v2492_v26  ;;  %v2462_v5 = vld [vmem:[#allocation3 + $0x1f8] sm:$0xf0] }
  0x73   :  { %1442 = vmatpush.bf16.msrb.mxu2 %v2857_v18  ;;  %1430 = vmatmul.bf16.vlgmr.msra.gmra.mxu3 %v3653_v33  ;;  %v3361_v18 = vld [vmem:[#allocation3 + $0x354] sm:$0xf0]  ;;  %v2476_v44 = vld [vmem:[#allocation3 + $0x208] sm:$0xf]  ;;  %v3279_v7 = vld [vmem:[#allocation3 + $0xcc] sm:$0xf] }
  0x74   :  { %1461 = vmatpush.bf16.msrb.mxu1 %v2333_v10  ;;  %1474 = vmatpush.bf16.msrb.mxu3 %v2461_v14  ;;  %v2380_v10 = vld [vmem:[#allocation3 + $0x148] sm:$0xf]  ;;  %v2637_v25 = vor.u32 %v3361_v18, %v2636_v17  ;;  %v3289_v36 = vld [vmem:[#allocation3 + $0x114] sm:$0xf0]  ;;  %v2318_v8 = vld [vmem:[#allocation3 + $0xd8] sm:$0xf0] }
  0x75   :  { %1487 = vmatpush.bf16.msra.mxu0 %v2589_v21  ;;  %1417 = vmatmul.bf16.vlgmr.msra.gmra.mxu1 %v3638_v0  ;;  %v2508_v14 = vld [vmem:[#allocation3 + $0x248] sm:$0xf]  ;;  %v2381_v19 = vor.u32 %v3297_v11, %v2380_v10  ;;  %v3261_v21 = vld [vmem:[#allocation3 + $0x34] sm:$0xf0]  ;;  %v3311_v17 = vld [vmem:[#allocation3 + $0x1cc] sm:$0xf] }
  0x76   :  { %1443 = vmatmul.bf16.vlgmr.msrb.gmra.mxu2 %v3655_v38  ;;  %v3413_v39 = vld [vmem:[#allocation3 + $0x4f4] sm:$0xf0]  ;;  %v2988_v53 = vld [vmem:[#allocation3 + $0x608] sm:$0xf]  ;;  %v2446_v18 = vld [vmem:[#allocation3 + $0x1d8] sm:$0xf0] }
  0x77   :  { %1500 = vmatpush.bf16.msra.mxu2 %v2717_v22  ;;  %v2364_v22 = vld [vmem:[#allocation3 + $0x128] sm:$0xf]  ;;  %v3445_v43 = vld [vmem:[#allocation3 + $0x5f4] sm:$0xf0] }
  0x78   :  { %1462 = vmatpush.bf16.msrb.mxu1 %v2317_v24  ;;  %1475 = vmatpush.bf16.msrb.mxu3 %v2445_v28  ;;  %v2509_v24 = vor.u32 %v3329_v16, %v2508_v14  ;;  %v2237_v28 = vor.u32 %v3261_v21, %v2236_v20  ;;  %v2365_v32 = vor.u32 %v3293_v23, %v2364_v22  ;;  %v3321_v45 = vld [vmem:[#allocation3 + $0x214] sm:$0xf0]  ;;  %v2828_v58 = vld [vmem:[#allocation3 + $0x4c8] sm:$0xf]  ;;  %v3275_v20 = vld [vmem:[#allocation3 + $0xac] sm:$0xf] }
  0x79   :  { %1488 = vmatpush.bf16.msra.mxu0 %v2573_v34  ;;  %v3257_v34 = vld [vmem:[#allocation3 + $0x14] sm:$0xf0]  ;;  %v2973_v56 = vor.u32 %v3445_v43, %v2972_v40  ;;  %v2477_v60 = vor.u32 %v3321_v45, %v2476_v44  ;;  %v2812_v11 = vld [vmem:[#allocation3 + $0x4a8] sm:$0xf]  ;;  %v2321_v16 = vor.u32 %v3279_v7, %v2318_v8  ;;  %v2302_v21 = vld [vmem:[#allocation3 + $0xb8] sm:$0xf0] }
  0x7a   :  { %v2221_v46 = vor.u32 %v3257_v34, %v2220_v31  ;;  %v3409_v59 = vld [vmem:[#allocation3 + $0x4d4] sm:$0xf0]  ;;  %v2940_v14 = vld [vmem:[#allocation3 + $0x5a8] sm:$0xf]  ;;  %v2286_v34 = vld [vmem:[#allocation3 + $0x98] sm:$0xf0] }
  0x7b   :  { %1501 = vmatpush.bf16.msra.mxu2 %v2701_v35  ;;  %v2348_v35 = vld [vmem:[#allocation3 + $0x108] sm:$0xf]  ;;  %v3441_v1 = vld [vmem:[#allocation3 + $0x5d4] sm:$0xf0]  ;;  %v3303_v43 = vld [vmem:[#allocation3 + $0x18c] sm:$0xf] }
  0x7c   :  { %1463 = vmatpush.bf16.msrb.mxu1 %v2301_v37  ;;  %1476 = vmatpush.bf16.msrb.mxu3 %v2429_v42  ;;  %v2844_v37 = vld [vmem:[#allocation3 + $0x4e8] sm:$0xf]  ;;  %v2621_v42 = vor.u32 %v3357_v30, %v2620_v29  ;;  %v3433_v27 = vld [vmem:[#allocation3 + $0x594] sm:$0xf0]  ;;  %v3307_v29 = vld [vmem:[#allocation3 + $0x1ac] sm:$0xf] }
  0x7d   :  { %1489 = vmatpush.bf16.msra.mxu0 %v2557_v47  ;;  %v2604_v47 = vld [vmem:[#allocation3 + $0x308] sm:$0xf]  ;;  %v2845_v51 = vor.u32 %v3413_v39, %v2844_v37  ;;  %v2430_v30 = vld [vmem:[#allocation3 + $0x1b8] sm:$0xf0]  ;;  %v3397_v37 = vld [vmem:[#allocation3 + $0x474] sm:$0xf0] }
  0x7e   :  { %v2796_v23 = vld [vmem:[#allocation3 + $0x488] sm:$0xf]  ;;  %v2433_v39 = vor.u32 %v3307_v29, %v2430_v30  ;;  %v2414_v44 = vld [vmem:[#allocation3 + $0x198] sm:$0xf0]  ;;  %v3295_v7 = vld [vmem:[#allocation3 + $0x14c] sm:$0xf] }
  0x7f   :  { %1502 = vmatpush.bf16.msra.mxu2 %v2685_v48  ;;  %v3353_v48 = vld [vmem:[#allocation3 + $0x314] sm:$0xf0]  ;;  %v2924_v26 = vld [vmem:[#allocation3 + $0x588] sm:$0xf]  ;;  %v2382_v8 = vld [vmem:[#allocation3 + $0x158] sm:$0xf0] }
  0x80   :  { %1464 = vmatpush.bf16.msrb.mxu1 %v2285_v50  ;;  %1477 = vmatpush.bf16.msrb.mxu3 %v2413_v54  ;;  %v2349_v50 = vor.u32 %v3289_v36, %v2348_v35  ;;  %v3449_v54 = vld [vmem:[#allocation3 + $0x614] sm:$0xf0]  ;;  %v2925_v35 = vor.u32 %v3433_v27, %v2924_v26  ;;  %v2780_v36 = vld [vmem:[#allocation3 + $0x468] sm:$0xf]  ;;  %v3255_v27 = vld [vmem:[#allocation3 + $0xc] sm:$0xf] }
  0x81   :  { %1490 = vmatpush.bf16.msra.mxu0 %v2541_v61  ;;  %v2605_v61 = vor.u32 %v3353_v48, %v2604_v47  ;;  %v2989_v3 = vor.u32 %v3449_v54, %v2988_v53  ;;  %v2908_v40 = vld [vmem:[#allocation3 + $0x568] sm:$0xf]  ;;  %v2781_v45 = vor.u32 %v3397_v37, %v2780_v36  ;;  %v2270_v47 = vld [vmem:[#allocation3 + $0x78] sm:$0xf0]  ;;  %v3425_v53 = vld [vmem:[#allocation3 + $0x554] sm:$0xf0] }
  0x82   :  { %2995 = vmatmul.msk.bf16.vlgmr.msrb.gmra.mxu0 %vm1275_vm0, %v3649_v62  ;;  %v3343_v36 = vld [vmem:[#allocation3 + $0x2cc] sm:$0xf]  ;;  %v2574_v37 = vld [vmem:[#allocation3 + $0x2d8] sm:$0xf0] }
  0x83   :  { %1503 = vmatpush.bf16.msra.mxu2 %v2669_v63  ;;  %v2956_v63 = vld [vmem:[#allocation3 + $0x5c8] sm:$0xf] }
  0x84   :  { %1465 = vmatpush.bf16.msrb.mxu1 %v2269_v2  ;;  %1478 = vmatpush.bf16.msrb.mxu3 %v2397_v6  ;;  %v2337_v2 = vor.u32 %v3283_v49, %v2334_v52  ;;  %v2829_v6 = vor.u32 %v3409_v59, %v2828_v58  ;;  %v2957_v10 = vor.u32 %v3441_v1, %v2956_v63  ;;  %v2764_v49 = vld [vmem:[#allocation3 + $0x448] sm:$0xf]  ;;  %v2398_v58 = vld [vmem:[#allocation3 + $0x178] sm:$0xf0] }
  0x85   :  { %1491 = vmatpush.bf16.msra.mxu0 %v2525_v12  ;;  %v3405_v12 = vld [vmem:[#allocation3 + $0x4b4] sm:$0xf0]  ;;  %v2892_v52 = vld [vmem:[#allocation3 + $0x548] sm:$0xf] }
  0x86   :  { %v2893_v63 = vor.u32 %v3425_v53, %v2892_v52  ;;  %v2748_v1 = vld [vmem:[#allocation3 + $0x428] sm:$0xf]  ;;  %v3339_v52 = vld [vmem:[#allocation3 + $0x2ac] sm:$0xf]  ;;  %v2558_v53 = vld [vmem:[#allocation3 + $0x2b8] sm:$0xf0] }
  0x87   :  { %1504 = vmatpush.bf16.msra.mxu2 %v2653_v13  ;;  %v2465_v13 = vor.u32 %v3315_v4, %v2462_v5  ;;  %v2876_v4 = vld [vmem:[#allocation3 + $0x528] sm:$0xf]  ;;  %v3421_v5 = vld [vmem:[#allocation3 + $0x534] sm:$0xf0] }
  0x88   :  { %1466 = vmatpush.bf16.msrb.mxu1 %v2253_v15  ;;  %1479 = vmatpush.bf16.msrb.mxu3 %v2381_v19  ;;  %v3437_v15 = vld [vmem:[#allocation3 + $0x5b4] sm:$0xf0]  ;;  %v2813_v19 = vor.u32 %v3405_v12, %v2812_v11  ;;  %v3259_v11 = vld [vmem:[#allocation3 + $0x2c] sm:$0xf]  ;;  %v2238_v12 = vld [vmem:[#allocation3 + $0x38] sm:$0xf0] }
  0x89   :  { %1492 = vmatpush.bf16.msra.mxu0 %v2509_v24  ;;  %v2941_v22 = vor.u32 %v3437_v15, %v2940_v14  ;;  %v3401_v24 = vld [vmem:[#allocation3 + $0x494] sm:$0xf0]  ;;  %v2877_v14 = vor.u32 %v3421_v5, %v2876_v4  ;;  %v3335_v4 = vld [vmem:[#allocation3 + $0x28c] sm:$0xf]  ;;  %v2542_v5 = vld [vmem:[#allocation3 + $0x298] sm:$0xf0] }
  0x8a   :  { %v2797_v31 = vor.u32 %v3401_v24, %v2796_v23  ;;  %v3385_v15 = vld [vmem:[#allocation3 + $0x414] sm:$0xf0]  ;;  %v2718_v23 = vld [vmem:[#allocation3 + $0x3f8] sm:$0xf0]  ;;  %v3291_v24 = vld [vmem:[#allocation3 + $0x12c] sm:$0xf] }
  0x8b   :  { %1505 = vmatpush.bf16.msra.mxu2 %v2637_v25  ;;  %v2449_v25 = vor.u32 %v3311_v17, %v2446_v18  ;;  %v3417_v17 = vld [vmem:[#allocation3 + $0x514] sm:$0xf0]  ;;  %v2385_v18 = vor.u32 %v3295_v7, %v2382_v8  ;;  %v3367_v7 = vld [vmem:[#allocation3 + $0x38c] sm:$0xf]  ;;  %v2670_v8 = vld [vmem:[#allocation3 + $0x398] sm:$0xf0] }
  0x8c   :  { %1467 = vmatpush.bf16.msrb.mxu1 %v2237_v28  ;;  %1480 = vmatpush.bf16.msrb.mxu3 %v2365_v32  ;;  %v2305_v28 = vor.u32 %v3275_v20, %v2302_v21  ;;  %v3271_v32 = vld [vmem:[#allocation3 + $0x8c] sm:$0xf]  ;;  %v2590_v20 = vld [vmem:[#allocation3 + $0x2f8] sm:$0xf0] }
  0x8d   :  { %1493 = vmatpush.bf16.msra.mxu0 %v2493_v41  ;;  %v3429_v41 = vld [vmem:[#allocation3 + $0x574] sm:$0xf0]  ;;  %v3379_v21 = vld [vmem:[#allocation3 + $0x3ec] sm:$0xf] }
  0x8e   :  { %v2909_v48 = vor.u32 %v3429_v41, %v2908_v40  ;;  %v2702_v41 = vld [vmem:[#allocation3 + $0x3d8] sm:$0xf0] }
  0x8f   :  { %1506 = vmatpush.bf16.msra.mxu2 %v2621_v42  ;;  %v2289_v42 = vor.u32 %v3271_v32, %v2286_v34  ;;  %v2846_v32 = vld [vmem:[#allocation3 + $0x4f8] sm:$0xf0]  ;;  %v2721_v34 = vor.u32 %v3379_v21, %v2718_v23  ;;  %v3431_v23 = vld [vmem:[#allocation3 + $0x58c] sm:$0xf] }
  0x90   :  { %1468 = vmatpush.bf16.msrb.mxu1 %v2221_v46  ;;  %1481 = vmatpush.bf16.msrb.mxu3 %v2349_v50  ;;  %v3267_v46 = vld [vmem:[#allocation3 + $0x6c] sm:$0xf]  ;;  %v3393_v50 = vld [vmem:[#allocation3 + $0x454] sm:$0xf0]  ;;  %v2654_v21 = vld [vmem:[#allocation3 + $0x378] sm:$0xf0] }
  0x91   :  { %1494 = vmatpush.bf16.msra.mxu0 %v2477_v60  ;;  %v2273_v54 = vor.u32 %v3267_v46, %v2270_v47  ;;  %v2765_v59 = vor.u32 %v3393_v50, %v2764_v49  ;;  %v3263_v60 = vld [vmem:[#allocation3 + $0x4c] sm:$0xf]  ;;  %v2974_v46 = vld [vmem:[#allocation3 + $0x5f8] sm:$0xf0]  ;;  %v2577_v47 = vor.u32 %v3343_v36, %v2574_v37 }
  0x92   :  { %v2830_v49 = vld [vmem:[#allocation3 + $0x4d8] sm:$0xf0]  ;;  %v3427_v36 = vld [vmem:[#allocation3 + $0x56c] sm:$0xf] }
  0x93   :  { %1507 = vmatpush.bf16.msra.mxu2 %v2605_v61  ;;  %1482 = vmatmul.bf16.vlgmr.msrb.gmra.mxu3 %v3642_v9  ;;  %v2254_v61 = vld [vmem:[#allocation3 + $0x58] sm:$0xf0] }
  0x94   :  { %1513 = vmatpush.bf16.msra.mxu1 %v2845_v51  ;;  %1526 = vmatpush.bf16.msra.mxu3 %v2973_v56  ;;  %v2417_v51 = vor.u32 %v3303_v43, %v2414_v44  ;;  %v3299_v56 = vld [vmem:[#allocation3 + $0x16c] sm:$0xf]  ;;  %v2350_v43 = vld [vmem:[#allocation3 + $0x118] sm:$0xf0] }
  0x95   :  { %1546 = vmatpush.bf16.msrb.mxu0 %v2989_v3  ;;  %1469 = vmatmul.bf16.vlgmr.msrb.gmra.mxu1 %v3636_v57  ;;  %v2401_v3 = vor.u32 %v3299_v56, %v2398_v58  ;;  %v3371_v56 = vld [vmem:[#allocation3 + $0x3ac] sm:$0xf]  ;;  %v2686_v58 = vld [vmem:[#allocation3 + $0x3b8] sm:$0xf0] }
  0x96   :  { %1495 = vmatmul.bf16.vlgmr.msra.gmra.mxu0 %v3634_v55  ;;  %1508 = vmatmul.bf16.vlgmr.msra.gmra.mxu2 %v3638_v0  ;;  %v2910_v37 = vld [vmem:[#allocation3 + $0x578] sm:$0xf0] }
  0x97   :  { %1552 = vmatpush.bf16.msrb.mxu2 %v2337_v2  ;;  %v3389_v2 = vld [vmem:[#allocation3 + $0x434] sm:$0xf0] }
  0x98   :  { %1514 = vmatpush.bf16.msra.mxu1 %v2829_v6  ;;  %1527 = vmatpush.bf16.msra.mxu3 %v2957_v10  ;;  %v2257_v6 = vor.u32 %v3263_v60, %v2254_v61  ;;  %v2749_v10 = vor.u32 %v3389_v2, %v2748_v1  ;;  %v3439_v60 = vld [vmem:[#allocation3 + $0x5cc] sm:$0xf]  ;;  %v2958_v61 = vld [vmem:[#allocation3 + $0x5d8] sm:$0xf0] }
  0x99   :  { %1565 = vmatpush.bf16.msra.mxu0 %v2465_v13  ;;  %v2732_v13 = vld [vmem:[#allocation3 + $0x408] sm:$0xf]  ;;  %v3403_v1 = vld [vmem:[#allocation3 + $0x4ac] sm:$0xf]  ;;  %v2814_v2 = vld [vmem:[#allocation3 + $0x4b8] sm:$0xf0] }
  0x9a   :  { %v2733_v26 = vor.u32 %v3385_v15, %v2732_v13  ;;  %v2545_v13 = vor.u32 %v3335_v4, %v2542_v5  ;;  %v2798_v15 = vld [vmem:[#allocation3 + $0x498] sm:$0xf0]  ;;  %v3056_v5 = vld [vmem:[#allocation5 + $0x70] sm:$0xf] }
  0x9b   :  { %1553 = vmatpush.bf16.msrb.mxu2 %v2321_v16  ;;  %v2860_v16 = vld [vmem:[#allocation3 + $0x508] sm:$0xf] }
  0x9c   :  { %1515 = vmatpush.bf16.msra.mxu1 %v2813_v19  ;;  %1528 = vmatpush.bf16.msra.mxu3 %v2941_v22  ;;  %v3347_v19 = vld [vmem:[#allocation3 + $0x2ec] sm:$0xf]  ;;  %v2241_v22 = vor.u32 %v3259_v11, %v2238_v12  ;;  %v2861_v29 = vor.u32 %v3417_v17, %v2860_v16  ;;  %v2942_v12 = vld [vmem:[#allocation3 + $0x5b8] sm:$0xf0]  ;;  %v2673_v16 = vor.u32 %v3367_v7, %v2670_v8 }
  0x9d   :  { %1566 = vmatpush.bf16.msra.mxu0 %v2449_v25  ;;  %v2366_v25 = vld [vmem:[#allocation3 + $0x138] sm:$0xf0]  ;;  %v2593_v30 = vor.u32 %v3347_v19, %v2590_v20  ;;  %v3435_v11 = vld [vmem:[#allocation3 + $0x5ac] sm:$0xf] }
  0x9e   :  { %v3331_v17 = vld [vmem:[#allocation3 + $0x26c] sm:$0xf]  ;;  %v2945_v19 = vor.u32 %v3435_v11, %v2942_v12  ;;  %v2990_v8 = vld [vmem:[#allocation3 + $0x618] sm:$0xf0]  ;;  %v3465_v11 = vld [vmem:[#allocation5 + $0x74] sm:$0xf0] }
  0x9f   :  { %1554 = vmatpush.bf16.msrb.mxu2 %v2305_v28  ;;  %v2222_v28 = vld [vmem:[#allocation3 + $0x18] sm:$0xf0]  ;;  %v3363_v20 = vld [vmem:[#allocation3 + $0x36c] sm:$0xf] }
  0xa0   :  { %1516 = vmatpush.bf16.msra.mxu1 %v2797_v31  ;;  %1529 = vmatpush.bf16.msra.mxu3 %v2925_v35  ;;  %v3411_v31 = vld [vmem:[#allocation3 + $0x4ec] sm:$0xf]  ;;  %v2369_v35 = vor.u32 %v3291_v24, %v2366_v25  ;;  %v2225_v40 = vor.u32 %v3255_v27, %v2222_v28  ;;  %v2926_v24 = vld [vmem:[#allocation3 + $0x598] sm:$0xf0] }
  0xa1   :  { %1567 = vmatpush.bf16.msra.mxu0 %v2433_v39  ;;  %v3375_v39 = vld [vmem:[#allocation3 + $0x3cc] sm:$0xf]  ;;  %v2849_v44 = vor.u32 %v3411_v31, %v2846_v32  ;;  %v2782_v27 = vld [vmem:[#allocation3 + $0x478] sm:$0xf0] }
  0xa2   :  { %v2705_v50 = vor.u32 %v3375_v39, %v2702_v41  ;;  %v3327_v28 = vld [vmem:[#allocation3 + $0x24c] sm:$0xf]  ;;  %v3684_v39 = vld [vmem:[%s3722_s2] sm:$0xf] }
  0xa3   :  { %1555 = vmatpush.bf16.msrb.mxu2 %v2289_v42  ;;  %v3287_v42 = vld [vmem:[#allocation3 + $0x10c] sm:$0xf] }
  0xa4   :  { %1517 = vmatpush.bf16.msra.mxu1 %v2781_v45  ;;  %1530 = vmatpush.bf16.msra.mxu3 %v2909_v48  ;;  %v3443_v45 = vld [vmem:[#allocation3 + $0x5ec] sm:$0xf] }
  0xa5   :  { %1568 = vmatpush.bf16.msra.mxu0 %v2417_v51  ;;  %v3407_v48 = vld [vmem:[#allocation3 + $0x4cc] sm:$0xf]  ;;  %v2353_v51 = vor.u32 %v3287_v42, %v2350_v43  ;;  %v2766_v43 = vld [vmem:[#allocation3 + $0x458] sm:$0xf0] }
  0xa6   :  { %2996 = vmatmul.msk.bf16.vlgmr.msrb.gmra.mxu0 %vm1275_vm0, %v3649_v62  ;;  %v3359_v32 = vld [vmem:[#allocation3 + $0x34c] sm:$0xf] }
  0xa7   :  { %1556 = vmatpush.bf16.msrb.mxu2 %v2273_v54  ;;  %v2977_v54 = vor.u32 %v3443_v45, %v2974_v46  ;;  %v3391_v42 = vld [vmem:[#allocation3 + $0x44c] sm:$0xf] }
  0xa8   :  { %1518 = vmatpush.bf16.msra.mxu1 %v2765_v59  ;;  %1531 = vmatpush.bf16.msra.mxu3 %v2893_v63  ;;  %v2833_v59 = vor.u32 %v3407_v48, %v2830_v49  ;;  %v2561_v63 = vor.u32 %v3339_v52, %v2558_v53  ;;  %v3323_v46 = vld [vmem:[#allocation3 + $0x22c] sm:$0xf]  ;;  %v2913_v48 = vor.u32 %v3427_v36, %v2910_v37  ;;  %v287_v52 = vperm.slane %v3684_v39, 0  ;;  %v3040_v37 = vld [vmem:[#allocation5 + $0x50] sm:$0xf] }
  0xa9   :  { %1569 = vmatpush.bf16.msra.mxu0 %v2401_v3  ;;  %v2689_v3 = vor.u32 %v3371_v56, %v2686_v58  ;;  %v3355_v49 = vld [vmem:[#allocation3 + $0x32c] sm:$0xf]  ;;  %v2769_v53 = vor.u32 %v3391_v42, %v2766_v43  ;;  %v2894_v56 = vld [vmem:[#allocation3 + $0x558] sm:$0xf0]  ;;  %v3104_v43 = vld [vmem:[#allocation5 + $0xd0] sm:$0xf] }
  0xaa   :  { %v3447_v7 = vld [vmem:[#allocation3 + $0x60c] sm:$0xf] }
  0xab   :  { %1557 = vmatpush.bf16.msrb.mxu2 %v2257_v6  ;;  %v2961_v6 = vor.u32 %v3439_v60, %v2958_v61  ;;  %v2750_v60 = vld [vmem:[#allocation3 + $0x438] sm:$0xf0]  ;;  %v3319_v61 = vld [vmem:[#allocation3 + $0x20c] sm:$0xf] }
  0xac   :  { %1519 = vmatpush.bf16.msra.mxu1 %v2749_v10  ;;  %1532 = vmatpush.bf16.msra.mxu3 %v2877_v14  ;;  %v2817_v10 = vor.u32 %v3403_v1, %v2814_v2  ;;  %v3399_v14 = vld [vmem:[#allocation3 + $0x48c] sm:$0xf]  ;;  %v2478_v1 = vld [vmem:[#allocation3 + $0x218] sm:$0xf0] }
  0xad   :  { %1570 = vmatpush.bf16.msra.mxu0 %v2385_v18  ;;  %v2526_v18 = vld [vmem:[#allocation3 + $0x278] sm:$0xf0]  ;;  %v3351_v2 = vld [vmem:[#allocation3 + $0x30c] sm:$0xf] }
  0xae   :  { %v2529_v25 = vor.u32 %v3331_v17, %v2526_v18  ;;  %v3419_v12 = vld [vmem:[#allocation3 + $0x52c] sm:$0xf]  ;;  %v2734_v17 = vld [vmem:[#allocation3 + $0x418] sm:$0xf0] }
  0xaf   :  { %1558 = vmatpush.bf16.msrb.mxu2 %v2241_v22 }
  0xb0   :  { %1520 = vmatpush.bf16.msra.mxu1 %v2733_v26  ;;  %1533 = vmatpush.bf16.msra.mxu3 %v2861_v29  ;;  %v3395_v26 = vld [vmem:[#allocation3 + $0x46c] sm:$0xf]  ;;  %v2510_v29 = vld [vmem:[#allocation3 + $0x258] sm:$0xf0] }
  0xb1   :  { %1571 = vmatpush.bf16.msra.mxu0 %v2369_v35  ;;  %v2785_v35 = vor.u32 %v3395_v26, %v2782_v27  ;;  %v2513_v41 = vor.u32 %v3327_v28, %v2510_v29  ;;  %v3048_v27 = vld [vmem:[#allocation5 + $0x60] sm:$0xf]  ;;  %v3415_v28 = vld [vmem:[#allocation3 + $0x50c] sm:$0xf]  ;;  %v2862_v29 = vld [vmem:[#allocation3 + $0x518] sm:$0xf0] }
  0xb2   :  { %v2865_v36 = vor.u32 %v3415_v28, %v2862_v29 }
  0xb3   :  { %1521 = vmatmul.bf16.vlgmr.msra.gmra.mxu1 %v3653_v33  ;;  %1559 = vmatpush.bf16.msrb.mxu2 %v2225_v40  ;;  %v3677_v22 = vpop.f32.mrf.mxu0 }
  0xb4   :  { %1578 = vmatpush.bf16.msrb.mxu1 %v2593_v30  ;;  %1591 = vmatpush.bf16.msrb.mxu3 %v2721_v34  ;;  %v2929_v30 = vor.u32 %v3431_v23, %v2926_v24  ;;  %v2638_v34 = vld [vmem:[#allocation3 + $0x358] sm:$0xf0]  ;;  %v1289_v23 = vadd.f32 %v3677_v22, %v287_v52  ;;  %v3057_v24 = vor.u32 %v3465_v11, %v3056_v5 }
  0xb5   :  { %1534 = vmatmul.bf16.vlgmr.msra.gmra.mxu3 %v3655_v38  ;;  %1572 = vmatpush.bf16.msra.mxu0 %v2353_v51 }
  0xb6   :  { %1560 = vmatmul.bf16.vlgmr.msrb.gmra.mxu2 %v3636_v57  ;;  %v2801_v57 = vor.u32 %v3399_v14, %v2798_v15  ;;  %v3679_v31 = vpop.f32.mrf.mxu1  ;;  %v2481_v15 = vor.u32 %v3319_v61, %v2478_v1  ;;  %v3455_v1 = vld [vmem:[#allocation5 + $0x24] sm:$0xf0] }
  0xb7   :  { %1604 = vmatpush.bf16.msra.mxu2 %v2849_v44  ;;  %v2641_v44 = vor.u32 %v3359_v32, %v2638_v34  ;;  %v3112_v32 = vld [vmem:[#allocation5 + $0xe0] sm:$0xf]  ;;  %v3479_v34 = vld [vmem:[#allocation5 + $0xe4] sm:$0xf0] }
  0xb8   :  { %1579 = vmatpush.bf16.msrb.mxu1 %v2577_v47  ;;  %1592 = vmatpush.bf16.msrb.mxu3 %v2705_v50  ;;  %v2494_v47 = vld [vmem:[#allocation3 + $0x238] sm:$0xf0]  ;;  %v3113_v42 = vor.u32 %v3479_v34, %v3112_v32  ;;  %v3050_v32 = vld [vmem:[#allocation5 + $0x68] sm:$0xf0] }
  0xb9   :  { %1617 = vmatpush.bf16.msrb.mxu0 %v2977_v54  ;;  %v3686_v40 = vpop.f32.mrf.mxu2  ;;  %v2622_v50 = vld [vmem:[#allocation3 + $0x338] sm:$0xf0]  ;;  %v3423_v54 = vld [vmem:[#allocation3 + $0x54c] sm:$0xf]  ;;  %v2497_v58 = vor.u32 %v3323_v46, %v2494_v47  ;;  %v3032_v47 = vld [vmem:[#allocation5 + $0x40] sm:$0xf] }
  0xba   :  { %1573 = vmatmul.bf16.vlgmr.msra.gmra.mxu0 %v3642_v9  ;;  %v2657_v9 = vor.u32 %v3363_v20, %v2654_v21  ;;  %v3688_v45 = vpop.f32.mrf.mxu3  ;;  %v2897_v4 = vor.u32 %v3423_v54, %v2894_v56  ;;  %v3120_v21 = vld [vmem:[#allocation5 + $0xf0] sm:$0xf]  ;;  %v3457_v54 = vld [vmem:[#allocation5 + $0x34] sm:$0xf0] }
  0xbb   :  { %1605 = vmatpush.bf16.msra.mxu2 %v2833_v59  ;;  %v1290_v51 = vpop.f32.mrf.mxu0  ;;  %v3387_v59 = vld [vmem:[#allocation3 + $0x42c] sm:$0xf] }
  0xbc   :  { %1580 = vmatpush.bf16.msrb.mxu1 %v2561_v63  ;;  %1593 = vmatpush.bf16.msrb.mxu3 %v2689_v3  ;;  %v2625_v63 = vor.u32 %v3355_v49, %v2622_v50  ;;  %v2606_v3 = vld [vmem:[#allocation3 + $0x318] sm:$0xf0]  ;;  %v3096_v50 = vld [vmem:[#allocation5 + $0xc0] sm:$0xf]  ;;  %v3475_v51 = vld [vmem:[#allocation5 + $0xc4] sm:$0xf0] }
  0xbd   :  { %1618 = vmatpush.bf16.msrb.mxu0 %v2961_v6  ;;  %v2609_v18 = vor.u32 %v3351_v2, %v2606_v3 }
  0xbe   :  { %v1303_v6 = vpop.f32.mrf.mxu1 }
  0xbf   :  { %1606 = vmatpush.bf16.msra.mxu2 %v2817_v10  ;;  %v2753_v10 = vor.u32 %v3387_v59, %v2750_v60  ;;  %v3088_v59 = vld [vmem:[#allocation5 + $0xb0] sm:$0xf]  ;;  %v3473_v60 = vld [vmem:[#allocation5 + $0xb4] sm:$0xf0] }
  0xc0   :  { %1581 = vmatpush.bf16.msrb.mxu1 %v2545_v13  ;;  %1594 = vmatpush.bf16.msrb.mxu3 %v2673_v16  ;;  %v2878_v13 = vld [vmem:[#allocation3 + $0x538] sm:$0xf0]  ;;  %v3383_v16 = vld [vmem:[#allocation3 + $0x40c] sm:$0xf]  ;;  %v3008_v6 = vld [vmem:[#allocation5 + $0x10] sm:$0xf] }
  0xc1   :  { %1619 = vmatpush.bf16.msrb.mxu0 %v2945_v19  ;;  %v1316_v14 = vpop.f32.mrf.mxu2  ;;  %v2993_v19 = vor.u32 %v3447_v7, %v2990_v8  ;;  %v2737_v26 = vor.u32 %v3383_v16, %v2734_v17  ;;  %v3453_v7 = vld [vmem:[#allocation5 + $0x14] sm:$0xf0]  ;;  %v3000_v17 = vld [vmem:[#allocation5] sm:$0xf] }
  0xc2   :  { %v1329_v20 = vpop.f32.mrf.mxu3  ;;  %v3072_v14 = vld [vmem:[#allocation5 + $0x90] sm:$0xf]  ;;  %v3009_v16 = vor.u32 %v3453_v7, %v3008_v6  ;;  %v3454_v7 = vld [vmem:[#allocation5 + $0x24] sm:$0xf] }
  0xc3   :  { %1607 = vmatpush.bf16.msra.mxu2 %v2801_v57  ;;  %v3481_v57 = vld [vmem:[#allocation5 + $0xf4] sm:$0xf0]  ;;  %v3464_v20 = vld [vmem:[#allocation5 + $0x74] sm:$0xf]  ;;  %v3168_v6 = vld [vmem:[#allocation5 + $0x150] sm:$0xf] }
  0xc4   :  { %1582 = vmatpush.bf16.msrb.mxu1 %v2529_v25  ;;  %1595 = vmatpush.bf16.msrb.mxu3 %v2657_v9  ;;  %v2881_v25 = vor.u32 %v3419_v12, %v2878_v13  ;;  %v3463_v9 = vld [vmem:[#allocation5 + $0x64] sm:$0xf0] }
  0xc5   :  { %1620 = vmatpush.bf16.msrb.mxu0 %v2929_v30  ;;  %v3121_v30 = vor.u32 %v3481_v57, %v3120_v21  ;;  %v3049_v22 = vor.u32 %v3463_v9, %v3048_v27  ;;  %v3058_v21 = vld [vmem:[#allocation5 + $0x78] sm:$0xf0] }
  0xc6   :  { %v3122_v27 = vld [vmem:[#allocation5 + $0xf8] sm:$0xf0]  ;;  %v3061_v9 = vor.u32 %v3464_v20, %v3058_v21 }
  0xc7   :  { %1608 = vmatpush.bf16.msra.mxu2 %v2785_v35  ;;  %v1302_v35 = vadd.f32 %v3679_v31, %v1289_v23  ;;  %v3064_v23 = vld [vmem:[#allocation5 + $0x80] sm:$0xf] }
  0xc8   :  { %1583 = vmatpush.bf16.msrb.mxu1 %v2513_v41  ;;  %1596 = vmatpush.bf16.msrb.mxu3 %v2641_v44  ;;  %v3461_v41 = vld [vmem:[#allocation5 + $0x54] sm:$0xf0] }
  0xc9   :  { %1621 = vmatpush.bf16.msrb.mxu0 %v2913_v48  ;;  %v3477_v44 = vld [vmem:[#allocation5 + $0xd4] sm:$0xf0]  ;;  %v1315_v46 = vadd.f32 %v3686_v40, %v1302_v35  ;;  %v3041_v31 = vor.u32 %v3461_v41, %v3040_v37  ;;  %v3459_v48 = vld [vmem:[#allocation5 + $0x44] sm:$0xf0]  ;;  %v3024_v40 = vld [vmem:[#allocation5 + $0x30] sm:$0xf] }
  0xca   :  { %v3105_v49 = vor.u32 %v3477_v44, %v3104_v43  ;;  %v3033_v52 = vor.u32 %v3459_v48, %v3032_v47  ;;  %v3025_v61 = vor.u32 %v3457_v54, %v3024_v40  ;;  %v3114_v37 = vld [vmem:[#allocation5 + $0xe8] sm:$0xf0]  ;;  %v3460_v43 = vld [vmem:[#allocation5 + $0x54] sm:$0xf]  ;;  %v3042_v44 = vld [vmem:[#allocation5 + $0x58] sm:$0xf0] }
  0xcb   :  { %1609 = vmatpush.bf16.msra.mxu2 %v2769_v53  ;;  %v3184_v47 = vld [vmem:[#allocation5 + $0x170] sm:$0xf] }
  0xcc   :  { %1584 = vmatpush.bf16.msrb.mxu1 %v2497_v58  ;;  %1597 = vmatpush.bf16.msrb.mxu3 %v2625_v63  ;;  %v3097_v58 = vor.u32 %v3475_v51, %v3096_v50  ;;  %v3016_v63 = vld [vmem:[#allocation5 + $0x20] sm:$0xf]  ;;  %v3497_v50 = vld [vmem:[#allocation5 + $0x174] sm:$0xf0]  ;;  %v3045_v51 = vor.u32 %v3460_v43, %v3042_v44  ;;  %v3466_v44 = vld [vmem:[#allocation5 + $0x84] sm:$0xf] }
  0xcd   :  { %1622 = vmatpush.bf16.msrb.mxu0 %v2897_v4  ;;  %v3471_v4 = vld [vmem:[#allocation5 + $0xa4] sm:$0xf0]  ;;  %v3017_v5 = vor.u32 %v3455_v1, %v3016_v63  ;;  %v3176_v1 = vld [vmem:[#allocation5 + $0x160] sm:$0xf] }
  0xcf   :  { %1610 = vmatpush.bf16.msra.mxu2 %v2753_v10  ;;  %v1340_v53 = vpop.f32.mrf.mxu0 }
  0xd0   :  { %1585 = vmatpush.bf16.msrb.mxu1 %v2481_v15  ;;  %1598 = vmatpush.bf16.msrb.mxu3 %v2609_v18  ;;  %v3469_v15 = vld [vmem:[#allocation5 + $0x94] sm:$0xf0]  ;;  %v3451_v18 = vld [vmem:[#allocation5 + $0x4] sm:$0xf0] }
  0xd1   :  { %1623 = vmatpush.bf16.msrb.mxu0 %v2881_v25  ;;  %v3073_v57 = vor.u32 %v3469_v15, %v3072_v14  ;;  %v3001_v25 = vor.u32 %v3451_v18, %v3000_v17  ;;  %v3470_v15 = vld [vmem:[#allocation5 + $0xa4] sm:$0xf]  ;;  %v3452_v18 = vld [vmem:[#allocation5 + $0x14] sm:$0xf] }
  0xd3   :  { %1586 = vmatmul.bf16.vlgmr.msrb.gmra.mxu1 %v3634_v55  ;;  %1611 = vmatpush.bf16.msra.mxu2 %v2737_v26  ;;  %v1366_v55 = vpop.f32.mrf.mxu2  ;;  %v3480_v26 = vld [vmem:[#allocation5 + $0xf4] sm:$0xf] }
  0xd4   :  { %1637 = vmatpush.bf16.msra.mxu1 %v2993_v19  ;;  %2049 = vmatpush.bf16.msra.mxu3 %v3057_v24  ;;  %v3467_v24 = vld [vmem:[#allocation5 + $0x84] sm:$0xf0]  ;;  %v3125_v35 = vor.u32 %v3480_v26, %v3122_v27  ;;  %v3468_v26 = vld [vmem:[#allocation5 + $0x94] sm:$0xf]  ;;  %v3074_v27 = vld [vmem:[#allocation5 + $0x98] sm:$0xf0] }
  0xd5   :  { %1599 = vmatmul.bf16.vlgmr.msrb.gmra.mxu3 %v3638_v0  ;;  %1624 = vmatpush.bf16.msrb.mxu0 %v2865_v36  ;;  %v1328_v0 = vadd.f32 %v3688_v45, %v1315_v46  ;;  %v3089_v45 = vor.u32 %v3473_v60, %v3088_v59  ;;  %v3065_v34 = vor.u32 %v3467_v24, %v3064_v23  ;;  %v3478_v36 = vld [vmem:[#allocation5 + $0xe4] sm:$0xf]  ;;  %v3456_v59 = vld [vmem:[#allocation5 + $0x34] sm:$0xf]  ;;  %v3026_v60 = vld [vmem:[#allocation5 + $0x38] sm:$0xf0] }
  0xd6   :  { %1612 = vmatmul.bf16.vlgmr.msra.gmra.mxu2 %v3653_v33  ;;  %v1353_v33 = vpop.f32.mrf.mxu1  ;;  %v3491_v23 = vld [vmem:[#allocation5 + $0x144] sm:$0xf0] }
  0xd7   :  { %v1341_v56 = vadd.f32 %v1340_v53, %v1328_v0  ;;  %v1342_v8 = vpop.f32.mrf.mxu0  ;;  %v3185_v0 = vor.u32 %v3497_v50, %v3184_v47  ;;  %v3034_v53 = vld [vmem:[#allocation5 + $0x48] sm:$0xf0]  ;;  %v3136_v50 = vld [vmem:[#allocation5 + $0x110] sm:$0xf] }
  0xd8   :  { %2062 = vmatpush.bf16.msrb.mxu1 %v3121_v30  ;;  %2050 = vmatpush.bf16.msra.mxu3 %v3049_v22  ;;  %v1379_v10 = vpop.f32.mrf.mxu3  ;;  %v3462_v30 = vld [vmem:[#allocation5 + $0x64] sm:$0xf]  ;;  %v288_v22 = vperm.slane %v3684_v39, 1  ;;  %v3018_v8 = vld [vmem:[#allocation5 + $0x28] sm:$0xf0] }
  0xd9   :  { %1625 = vmatmul.bf16.vlgmr.msrb.gmra.mxu0 %v3655_v38  ;;  %v1354_v2 = vadd.f32 %v1353_v33, %v1341_v56  ;;  %v3080_v38 = vld [vmem:[#allocation5 + $0xa0] sm:$0xf]  ;;  %2075 = vmatpush.bf16.msrb.mxu2 %v3185_v0  ;;  %v3474_v56 = vld [vmem:[#allocation5 + $0xc4] sm:$0xf]  ;;  %v3098_v33 = vld [vmem:[#allocation5 + $0xc8] sm:$0xf0]  ;;  %v3021_v17 = vor.u32 %v3454_v7, %v3018_v8 }
  0xda   :  { %v3081_v13 = vor.u32 %v3471_v4, %v3080_v38  ;;  %v1380_v48 = vadd.f32 %v1379_v10, %v288_v22  ;;  %v3101_v63 = vor.u32 %v3474_v56, %v3098_v33  ;;  %v3090_v38 = vld [vmem:[#allocation5 + $0xb8] sm:$0xf0]  ;;  %v3493_v10 = vld [vmem:[#allocation5 + $0x154] sm:$0xf0] }
  0xdb   :  { %v1368_v3 = vpop.f32.mrf.mxu2  ;;  %v1367_v11 = vadd.f32 %v1366_v55, %v1354_v2  ;;  %v3476_v55 = vld [vmem:[#allocation5 + $0xd4] sm:$0xf]  ;;  %v3495_v2 = vld [vmem:[#allocation5 + $0x164] sm:$0xf0]  ;;  %v3170_v8 = vld [vmem:[#allocation5 + $0x158] sm:$0xf0] }
  0xdc   :  { %2063 = vmatpush.bf16.msrb.mxu1 %v3113_v42  ;;  %2051 = vmatpush.bf16.msra.mxu3 %v3041_v31  ;;  %v3053_v42 = vor.u32 %v3462_v30, %v3050_v32  ;;  %v3117_v31 = vor.u32 %v3478_v36, %v3114_v37  ;;  %v3177_v4 = vor.u32 %v3495_v2, %v3176_v1  ;;  %v3489_v30 = vld [vmem:[#allocation5 + $0x134] sm:$0xf0]  ;;  %v3450_v32 = vld [vmem:[#allocation5 + $0x4] sm:$0xf]  ;;  %v3144_v37 = vld [vmem:[#allocation5 + $0x120] sm:$0xf] }
  0xdd   :  { %v1647_v19 = vmul.f32 0.2, %v1367_v11  ;;  %vm1643_vm1 = vcmp.gt.f32.partialorder %v1367_v11, 0.0  ;;  %v3077_v36 = vor.u32 %v3468_v26, %v3074_v27  ;;  %v3494_v2 = vld [vmem:[#allocation5 + $0x164] sm:$0xf] }
  0xde   :  { %v1355_v12 = vpop.f32.mrf.mxu1  ;;  %2076 = vmatpush.bf16.msrb.mxu2 %v3177_v4  ;;  %v3224_v26 = vld [vmem:[#allocation5 + $0x1c0] sm:$0xf]  ;;  %v3507_v27 = vld [vmem:[#allocation5 + $0x1c4] sm:$0xf0] }
  0xdf   :  { %v1651_v29 = vsel %vm1643_vm1, %v1367_v11, %v1647_v19  ;;  %v3010_v19 = vld [vmem:[#allocation5 + $0x18] sm:$0xf0] }
  0xe0   :  { %2064 = vmatpush.bf16.msrb.mxu1 %v3105_v49  ;;  %2052 = vmatpush.bf16.msra.mxu3 %v3033_v52  ;;  %v1381_v28 = vpop.f32.mrf.mxu3  ;;  %v3702_v41 = vpack.c.bf16 %v1651_v29, %v1651_v29  ;;  %v3106_v49 = vld [vmem:[#allocation5 + $0xd8] sm:$0xf0]  ;;  %v3458_v52 = vld [vmem:[#allocation5 + $0x44] sm:$0xf]  ;;  %v3152_v29 = vld [vmem:[#allocation5 + $0x130] sm:$0xf] }
  0xe1   :  { %v3109_v40 = vor.u32 %v3476_v55, %v3106_v49  ;;  %v3013_v28 = vor.u32 %v3452_v18, %v3010_v19 }
  0xe3   :  { %2997 = vmatmul.msk.bf16.vlgmr.msra.gmra.mxu1 %vm1275_vm0, %v3649_v62  ;;  %v1392_v62 = vpop.f32.mrf.mxu2 }
  0xe4   :  { %2065 = vmatpush.bf16.msrb.mxu1 %v3097_v58  ;;  %2053 = vmatpush.bf16.msra.mxu3 %v3025_v61  ;;  %v1393_v54 = vadd.f32 %v1392_v62, %v1380_v48  ;;  %v3037_v58 = vor.u32 %v3458_v52, %v3034_v53  ;;  %v3160_v62 = vld [vmem:[#allocation5 + $0x140] sm:$0xf] }
  0xe8   :  { %2066 = vmatpush.bf16.msrb.mxu1 %v3089_v45  ;;  %2054 = vmatpush.bf16.msra.mxu3 %v3017_v5  ;;  %v3472_v45 = vld [vmem:[#allocation5 + $0xb4] sm:$0xf]  ;;  %v3029_v5 = vor.u32 %v3456_v59, %v3026_v60  ;;  %v3483_v59 = vld [vmem:[#allocation5 + $0x104] sm:$0xf0] }
  0xe9   :  { %v3093_v12 = vor.u32 %v3472_v45, %v3090_v38 }
  0xeb   :  { %v1394_v46 = vpop.f32.mrf.mxu2 }
  0xec   :  { %2067 = vmatpush.bf16.msrb.mxu1 %v3081_v13  ;;  %2055 = vmatpush.bf16.msra.mxu3 %v3009_v16  ;;  %v3169_v13 = vor.u32 %v3493_v10, %v3168_v6  ;;  %v3082_v16 = vld [vmem:[#allocation5 + $0xa8] sm:$0xf0]  ;;  %v3492_v6 = vld [vmem:[#allocation5 + $0x154] sm:$0xf] }
  0xed   :  { %v3066_v46 = vld [vmem:[#allocation5 + $0x88] sm:$0xf0]  ;;  %v3173_v10 = vor.u32 %v3492_v6, %v3170_v8 }
  0xee   :  { %2077 = vmatpush.bf16.msrb.mxu2 %v3169_v13  ;;  %v3069_v49 = vor.u32 %v3466_v44, %v3066_v46  ;;  %v3511_v13 = vld [vmem:[#allocation5 + $0x1e4] sm:$0xf0] }
  0xef   :  { %v1405_v61 = vpop.f32.mrf.mxu0 }
  0xf0   :  { %2068 = vmatpush.bf16.msrb.mxu1 %v3073_v57  ;;  %2056 = vmatpush.bf16.msra.mxu3 %v3001_v25  ;;  %v1406_v3 = vadd.f32 %v1405_v61, %v1393_v54  ;;  %v3085_v57 = vor.u32 %v3470_v15, %v3082_v16  ;;  %v3496_v61 = vld [vmem:[#allocation5 + $0x174] sm:$0xf]  ;;  %v3162_v16 = vld [vmem:[#allocation5 + $0x148] sm:$0xf0] }
  0xf2   :  { %v1418_v11 = vpop.f32.mrf.mxu1 }
  0xf3   :  { %2057 = vmatmul.bf16.vlgmr.msra.gmra.mxu3 %v3702_v41  ;;  %v1419_v14 = vadd.f32 %v1418_v11, %v1406_v3  ;;  %v3178_v3 = vld [vmem:[#allocation5 + $0x168] sm:$0xf0] }
  0xf4   :  { %2101 = vmatpush.bf16.msrb.mxu3 %v3061_v9  ;;  %2069 = vmatpush.bf16.msrb.mxu1 %v3065_v34  ;;  %v3161_v9 = vor.u32 %v3491_v23, %v3160_v62  ;;  %v3002_v34 = vld [vmem:[#allocation5 + $0x8] sm:$0xf0]  ;;  %v3181_v45 = vor.u32 %v3494_v2, %v3178_v3  ;;  %v3488_v62 = vld [vmem:[#allocation5 + $0x134] sm:$0xf] }
  0xf6   :  { %v1431_v21 = vpop.f32.mrf.mxu3  ;;  %2078 = vmatpush.bf16.msrb.mxu2 %v3161_v9  ;;  %v3225_v9 = vor.u32 %v3507_v27, %v3224_v26  ;;  %v3210_v26 = vld [vmem:[#allocation5 + $0x1a8] sm:$0xf0]  ;;  %v290_v27 = vperm.slane %v3684_v39, 3 }
  0xf7   :  { %v1407_v20 = vpop.f32.mrf.mxu0  ;;  %v1432_v24 = vadd.f32 %v1431_v21, %v1419_v14  ;;  %v3490_v14 = vld [vmem:[#allocation5 + $0x144] sm:$0xf]  ;;  %v3232_v21 = vld [vmem:[#allocation5 + $0x1d0] sm:$0xf] }
  0xf8   :  { %2114 = vmatpush.bf16.msra.mxu1 %v3125_v35  ;;  %2102 = vmatpush.bf16.msrb.mxu3 %v3053_v42  ;;  %v3153_v35 = vor.u32 %v3489_v30, %v3152_v29  ;;  %v3487_v42 = vld [vmem:[#allocation5 + $0x124] sm:$0xf0]  ;;  %v3146_v29 = vld [vmem:[#allocation5 + $0x128] sm:$0xf0] }
  0xf9   :  { %v1444_v25 = vpop.f32.mrf.mxu2  ;;  %v3145_v47 = vor.u32 %v3487_v42, %v3144_v37  ;;  %v3138_v37 = vld [vmem:[#allocation5 + $0x118] sm:$0xf0] }
  0xfa   :  { %v1420_v22 = vpop.f32.mrf.mxu1  ;;  %v1445_v43 = vadd.f32 %v1444_v25, %v1432_v24  ;;  %2079 = vmatpush.bf16.msrb.mxu2 %v3153_v35  ;;  %v3154_v24 = vld [vmem:[#allocation5 + $0x138] sm:$0xf0]  ;;  %v3505_v35 = vld [vmem:[#allocation5 + $0x1b4] sm:$0xf0] }
  0xfb   :  { %v3157_v25 = vor.u32 %v3488_v62, %v3154_v24  ;;  %v289_v22 = vperm.slane %v3684_v39, 2  ;;  %v3504_v62 = vld [vmem:[#allocation5 + $0x1b4] sm:$0xf] }
  0xfc   :  { %2115 = vmatpush.bf16.msra.mxu1 %v3117_v31  ;;  %2103 = vmatpush.bf16.msrb.mxu3 %v3045_v51  ;;  %v3005_v31 = vor.u32 %v3450_v32, %v3002_v34  ;;  %v3485_v51 = vld [vmem:[#allocation5 + $0x114] sm:$0xf0]  ;;  %v3216_v34 = vld [vmem:[#allocation5 + $0x1b0] sm:$0xf] }
  0xfe   :  { %v1433_v55 = vpop.f32.mrf.mxu3  ;;  %2080 = vmatpush.bf16.msrb.mxu2 %v3145_v47  ;;  %v3208_v47 = vld [vmem:[#allocation5 + $0x1a0] sm:$0xf] }
  0xff   :  { %v1457_v48 = vpop.f32.mrf.mxu0  ;;  %v3482_v55 = vld [vmem:[#allocation5 + $0x104] sm:$0xf] }
 0x100   :  { %2116 = vmatpush.bf16.msra.mxu1 %v3109_v40  ;;  %2104 = vmatpush.bf16.msrb.mxu3 %v3037_v58  ;;  %v1458_v0 = vadd.f32 %v1457_v48, %v1445_v43  ;;  %v3137_v40 = vor.u32 %v3485_v51, %v3136_v50  ;;  %v3128_v58 = vld [vmem:[#allocation5 + $0x100] sm:$0xf]  ;;  %v3217_v43 = vor.u32 %v3505_v35, %v3216_v34  ;;  %v3503_v48 = vld [vmem:[#allocation5 + $0x1a4] sm:$0xf0]  ;;  %v3130_v51 = vld [vmem:[#allocation5 + $0x108] sm:$0xf0] }
 0x101   :  { %v1446_v52 = vpop.f32.mrf.mxu2  ;;  %v3129_v60 = vor.u32 %v3483_v59, %v3128_v58  ;;  %v3209_v50 = vor.u32 %v3503_v48, %v3208_v47  ;;  %v3192_v58 = vld [vmem:[#allocation5 + $0x180] sm:$0xf]  ;;  %v3499_v59 = vld [vmem:[#allocation5 + $0x184] sm:$0xf0] }
 0x102   :  { %vm1644_vm2 = vcmp.gt.f32.partialorder %v1458_v0, 0.0  ;;  %v1648_v53 = vmul.f32 0.2, %v1458_v0  ;;  %2081 = vmatpush.bf16.msrb.mxu2 %v3137_v40  ;;  %v3501_v40 = vld [vmem:[#allocation5 + $0x194] sm:$0xf0] }
 0x104   :  { %2117 = vmatpush.bf16.msra.mxu1 %v3101_v63  ;;  %2105 = vmatpush.bf16.msrb.mxu3 %v3029_v5  ;;  %v1652_v54 = vsel %vm1644_vm2, %v1458_v0, %v1648_v53  ;;  %v3186_v63 = vld [vmem:[#allocation5 + $0x178] sm:$0xf0]  ;;  %v3513_v5 = vld [vmem:[#allocation5 + $0x1f4] sm:$0xf0]  ;;  %v3133_v0 = vor.u32 %v3482_v55, %v3130_v51  ;;  %v3200_v53 = vld [vmem:[#allocation5 + $0x190] sm:$0xf] }
 0x105   :  { %v1656_v56 = vpack.c.bf16 %v1652_v54, %v1652_v54  ;;  %v3189_v1 = vor.u32 %v3496_v61, %v3186_v63  ;;  %v3193_v61 = vor.u32 %v3499_v59, %v3192_v58  ;;  %v3512_v63 = vld [vmem:[#allocation5 + $0x1f4] sm:$0xf] }
 0x106   :  { %2082 = vmatpush.bf16.msrb.mxu2 %v3129_v60  ;;  %v1723_v58 = vld [vmem:[%s3724_s4] sm:$0x3] }
 0x107   :  { %2070 = vmatmul.bf16.vlgmr.msrb.gmra.mxu1 %v1656_v56  ;;  %v1459_v33 = vpop.f32.mrf.mxu0  ;;  %v1725_v59 = vperm.slane %v1723_v58, 0 }
 0x108   :  { %2118 = vmatpush.bf16.msra.mxu1 %v3093_v12  ;;  %2106 = vmatpush.bf16.msrb.mxu3 %v3021_v17  ;;  %v3240_v12 = vld [vmem:[#allocation5 + $0x1e0] sm:$0xf]  ;;  %v3165_v17 = vor.u32 %v3490_v14, %v3162_v16  ;;  %v3201_v33 = vor.u32 %v3501_v40, %v3200_v53 }
 0x109   :  { %v3241_v15 = vor.u32 %v3511_v13, %v3240_v12  ;;  %v3508_v12 = vld [vmem:[#allocation5 + $0x1d4] sm:$0xf]  ;;  %v3234_v13 = vld [vmem:[#allocation5 + $0x1d8] sm:$0xf0] }
 0x10a   :  { %2127 = vmatpush.bf16.msra.mxu2 %v3189_v1  ;;  %v3250_v1 = vld [vmem:[#allocation5 + $0x1f8] sm:$0xf0]  ;;  %v3237_v16 = vor.u32 %v3508_v12, %v3234_v13 }
 0x10b   :  { %v3253_v2 = vor.u32 %v3512_v63, %v3250_v1  ;;  %v3522_v12 = vld [vmem:[#allocation2] ss:$0 sm:$0xff] }
 0x10c   :  { %2119 = vmatpush.bf16.msra.mxu1 %v3085_v57  ;;  %2107 = vmatpush.bf16.msrb.mxu3 %v3013_v28  ;;  %v3509_v57 = vld [vmem:[#allocation5 + $0x1d4] sm:$0xf0]  ;;  %v3486_v28 = vld [vmem:[#allocation5 + $0x124] sm:$0xf] }
 0x10d   :  { %v3233_v23 = vor.u32 %v3509_v57, %v3232_v21  ;;  %v3149_v32 = vor.u32 %v3486_v28, %v3146_v29  ;;  %v3500_v28 = vld [vmem:[#allocation5 + $0x194] sm:$0xf]  ;;  %v3202_v29 = vld [vmem:[#allocation5 + $0x198] sm:$0xf0] }
 0x10e   :  { %2128 = vmatpush.bf16.msra.mxu2 %v3181_v45 }
 0x110   :  { %2120 = vmatpush.bf16.msra.mxu1 %v3077_v36  ;;  %2108 = vmatpush.bf16.msrb.mxu3 %v3005_v31  ;;  %v3484_v36 = vld [vmem:[#allocation5 + $0x114] sm:$0xf] }
 0x111   :  { %v3141_v46 = vor.u32 %v3484_v36, %v3138_v37  ;;  %v3194_v36 = vld [vmem:[#allocation5 + $0x188] sm:$0xf0] }
 0x112   :  { %v1470_v4 = vpop.f32.mrf.mxu1  ;;  %2129 = vmatpush.bf16.msra.mxu2 %v3173_v10 }
 0x113   :  { %2109 = vmatmul.bf16.vlgmr.msrb.gmra.mxu3 %v3702_v41  ;;  %v3706_v38 = vpop.f32.mrf.mxu0  ;;  %v3248_v41 = vld [vmem:[#allocation5 + $0x1f0] sm:$0xf]  ;;  %v1471_v31 = vadd.f32 %v1470_v4, %v289_v22  ;;  %v3498_v22 = vld [vmem:[#allocation5 + $0x184] sm:$0xf] }
 0x114   :  { %2121 = vmatpush.bf16.msra.mxu1 %v3069_v49  ;;  %v3249_v7 = vor.u32 %v3513_v5, %v3248_v41  ;;  %v3510_v41 = vld [vmem:[#allocation5 + $0x1e4] sm:$0xf]  ;;  %v3242_v5 = vld [vmem:[#allocation5 + $0x1e8] sm:$0xf0]  ;;  %v3197_v37 = vor.u32 %v3498_v22, %v3194_v36 }
 0x116   :  { %2088 = vmatpush.bf16.msra.mxu0 %v3249_v7  ;;  %v1483_v11 = vpop.f32.mrf.mxu3  ;;  %2130 = vmatpush.bf16.msra.mxu2 %v3165_v17 }
 0x117   :  { %2122 = vmatmul.bf16.vlgmr.msra.gmra.mxu1 %v1656_v56  ;;  %v1484_v49 = vadd.f32 %v1483_v11, %v1471_v31 }
 0x119   :  { %v1509_v19 = vpop.f32.mrf.mxu2  ;;  %v1497_v54 = vadd.f32 %v3706_v38, %v1484_v49  ;;  %v3245_v38 = vor.u32 %v3510_v41, %v3242_v5 }
 0x11a   :  { %2089 = vmatpush.bf16.msra.mxu0 %v3241_v15  ;;  %v1472_v20 = vpop.f32.mrf.mxu1  ;;  %2131 = vmatpush.bf16.msra.mxu2 %v3157_v25  ;;  %v3502_v25 = vld [vmem:[#allocation5 + $0x1a4] sm:$0xf] }
 0x11b   :  { %v1498_v18 = vpop.f32.mrf.mxu0  ;;  %v1510_v60 = vadd.f32 %v1509_v19, %v1497_v54  ;;  %v3506_v19 = vld [vmem:[#allocation5 + $0x1c4] sm:$0xf]  ;;  %v3226_v20 = vld [vmem:[#allocation5 + $0x1c8] sm:$0xf0] }
 0x11c   :  { %v3229_v21 = vor.u32 %v3506_v19, %v3226_v20 }
 0x11e   :  { %2090 = vmatpush.bf16.msra.mxu0 %v3233_v23  ;;  %v1485_v30 = vpop.f32.mrf.mxu3  ;;  %2132 = vmatpush.bf16.msra.mxu2 %v3149_v32  ;;  %v3218_v23 = vld [vmem:[#allocation5 + $0x1b8] sm:$0xf0]  ;;  %v3205_v32 = vor.u32 %v3500_v28, %v3202_v29 }
 0x11f   :  { %v3221_v24 = vor.u32 %v3504_v62, %v3218_v23 }
 0x121   :  { %v1511_v44 = vpop.f32.mrf.mxu2 }
 0x122   :  { %2091 = vmatpush.bf16.msra.mxu0 %v3225_v9  ;;  %2133 = vmatpush.bf16.msra.mxu2 %v3141_v46  ;;  %v3213_v9 = vor.u32 %v3502_v25, %v3210_v26 }
 0x123   :  { %v1548_v42 = vpop.f32.mrf.mxu0 }
 0x126   :  { %2092 = vmatpush.bf16.msra.mxu0 %v3217_v43  ;;  %2134 = vmatpush.bf16.msra.mxu2 %v3133_v0 }
 0x12a   :  { %2093 = vmatpush.bf16.msra.mxu0 %v3209_v50 }
 0x12b   :  { %v1550_v52 = vpop.f32.mrf.mxu0 }
 0x12e   :  { %2094 = vmatpush.bf16.msra.mxu0 %v3201_v33 }
 0x130   :  { %v1522_v56 = vpop.f32.mrf.mxu1 }
 0x131   :  { %v1523_v3 = vadd.f32 %v1522_v56, %v1510_v60 }
 0x132   :  { %2095 = vmatpush.bf16.msra.mxu0 %v3193_v61 }
 0x136   :  { %2140 = vmatpush.bf16.msrb.mxu0 %v3253_v2 }
 0x137   :  { %v1574_v45 = vpop.f32.mrf.mxu0 }
 0x138   :  { %v1535_v4 = vpop.f32.mrf.mxu3  ;;  %v1524_v7 = vpop.f32.mrf.mxu1 }
 0x139   :  { %v1536_v6 = vadd.f32 %v1535_v4, %v1523_v3  ;;  %v1561_v10 = vpop.f32.mrf.mxu2  ;;  %v1726_v3 = vperm.slane %v1723_v58, 1 }
 0x13a   :  { %2141 = vmatpush.bf16.msrb.mxu0 %v3245_v38  ;;  %v1562_v30 = vadd.f32 %v1561_v10, %v290_v27 }
 0x13b   :  { %v1549_v8 = vadd.f32 %v1548_v42, %v1536_v6 }
 0x13c   :  { %v1575_v35 = vadd.f32 %v1574_v45, %v1562_v30 }
 0x13d   :  { %vm1645_vm3 = vcmp.gt.f32.partialorder %v1549_v8, 0.0  ;;  %v1649_v11 = vmul.f32 0.2, %v1549_v8 }
 0x13e   :  { %2142 = vmatpush.bf16.msrb.mxu0 %v3237_v16 }
 0x13f   :  { %v1653_v14 = vsel %vm1645_vm3, %v1549_v8, %v1649_v11  ;;  %v1576_v15 = vpop.f32.mrf.mxu0 }
 0x140   :  { %v1657_v17 = vpack.c.bf16 %v1653_v14, %v1653_v14  ;;  %v1537_v18 = vpop.f32.mrf.mxu3  ;;  %v3581_v14 = vmov 0  }
 0x141   :  { %v1563_v57 = vpop.f32.mrf.mxu2  ;;  %3521 = vset.pattern.permute.xlu0 %v3581_v14 }
 0x142   :  { %2083 = vmatmul.bf16.vlgmr.msrb.gmra.mxu2 %v1657_v17  ;;  %2143 = vmatpush.bf16.msrb.mxu0 %v3229_v21 }
 0x143   :  { %2166 = vperm.xlu0 %3521, %v3522_v12  }
 0x146   :  { %2144 = vmatpush.bf16.msrb.mxu0 %v3221_v24 }
 0x14a   :  { %2145 = vmatpush.bf16.msrb.mxu0 %v3213_v9 }
 0x14e   :  { %2146 = vmatpush.bf16.msrb.mxu0 %v3205_v32 }
 0x150   :  { %v1587_v34 = vpop.f32.mrf.mxu1 }
 0x151   :  { %v1588_v42 = vadd.f32 %v1587_v34, %v1575_v35 }
 0x152   :  { %2135 = vmatmul.bf16.vlgmr.msra.gmra.mxu2 %v1657_v17  ;;  %2147 = vmatpush.bf16.msrb.mxu0 %v3197_v37  ;;  %v2159_v17 = vld [vmem:[%s3725_s5] sm:$0xff] }
 0x153   :  { %v2170_v20 = vunpack.c.l.b16 %v2159_v17  ;;  %v2171_v9 = vunpack.c.h.b16 %v2159_v17 }
 0x155   :  { %v2172_v57 = vpack.c.b16 %v2170_v20, %v2170_v20  ;;  %v2173_v29 = vpack.c.b16 %v2171_v9, %v2171_v9 }
 0x156   :  { %v1626_v44 = vpop.f32.mrf.mxu0 }
 0x158   :  { %v1600_v43 = vpop.f32.mrf.mxu3  ;;  %v1589_v39 = vpop.f32.mrf.mxu1 }
 0x159   :  { %v1601_v46 = vadd.f32 %v1600_v43, %v1588_v42  ;;  %v1613_v31 = vpop.f32.mrf.mxu2 }
 0x15b   :  { %v1614_v47 = vadd.f32 %v1613_v31, %v1601_v46 }
 0x15d   :  { %v1627_v49 = vadd.f32 %v1626_v44, %v1614_v47 }
 0x15e   :  { %v1628_v55 = vpop.f32.mrf.mxu0 }
 0x160   :  { %v1602_v48 = vpop.f32.mrf.mxu3  ;;  %v1639_v50 = vpop.f32.mrf.mxu1 }
 0x161   :  { %v1640_v51 = vadd.f32 %v1639_v50, %v1627_v49  ;;  %v1615_v0 = vpop.f32.mrf.mxu2 }
 0x163   :  { %vm1646_vm4 = vcmp.gt.f32.partialorder %v1640_v51, 0.0  ;;  %v1650_v52 = vmul.f32 0.2, %v1640_v51 }
 0x165   :  { %v1654_v53 = vsel %vm1646_vm4, %v1640_v51, %v1650_v52 }
 0x166   :  { %v1658_v40 = vpack.c.bf16 %v1654_v53, %v1654_v53 }
 0x168   :  { %v1641_v54 = vpop.f32.mrf.mxu1  ;;  %2096 = vmatmul.bf16.vlgmr.msra.gmra.mxu0 %v1658_v40 }
 0x176   :  { %v2058_v56 = vpop.f32.mrf.mxu3 }
 0x177   :  { %v2059_v60 = vadd.f32 %v2058_v56, %v1725_v59 }
 0x178   :  { %2148 = vmatmul.bf16.vlgmr.msrb.gmra.mxu0 %v1658_v40 }
 0x17e   :  { %v2060_v33 = vpop.f32.mrf.mxu3 }
 0x184   :  { %v2071_v61 = vpop.f32.mrf.mxu1 }
 0x185   :  { %v2072_v63 = vadd.f32 %v2071_v61, %v2059_v60 }
 0x18c   :  { %v2073_v2 = vpop.f32.mrf.mxu1 }
 0x194   :  { %v2123_v41 = vpop.f32.mrf.mxu1 }
 0x196   :  { %v2110_v1 = vpop.f32.mrf.mxu3 }
 0x197   :  { %v2111_v4 = vadd.f32 %v2110_v1, %v1726_v3 }
 0x199   :  { %v2124_v5 = vadd.f32 %v2123_v41, %v2111_v4 }
 0x19c   :  { %v2125_v6 = vpop.f32.mrf.mxu1 }
 0x19e   :  { %v2112_v45 = vpop.f32.mrf.mxu3 }
 0x1b5   :  { %v2167_v32 = vpop.permute.xlu0 %2166 }
 0x1c5   :  { %v2084_v7 = vpop.f32.mrf.mxu2 }
 0x1c6   :  { %v2085_v11 = vadd.f32 %v2084_v7, %v2072_v63 }
 0x1cd   :  { %v2086_v38 = vpop.f32.mrf.mxu2 }
 0x1d5   :  { %v2136_v8 = vpop.f32.mrf.mxu2 }
 0x1d6   :  { %v2137_v62 = vadd.f32 %v2136_v8, %v2124_v5 }
 0x1dd   :  { %v2138_v10 = vpop.f32.mrf.mxu2 }
 0x1e5   :  { %v2097_v13 = vpop.f32.mrf.mxu0 }
 0x1e6   :  { %v2098_v15 = vadd.f32 %v2097_v13, %v2085_v11 }
 0x1e8   :  { %vm2153_vm5 = vcmp.gt.f32.partialorder %v2098_v15, 0.0  ;;  %v2155_v16 = vmul.f32 0.2, %v2098_v15 }
 0x1ea   :  { %v2157_v18 = vsel %vm2153_vm5, %v2098_v15, %v2155_v16 }
 0x1eb   :  { %v2160_v19 = vpack.c.bf16 %v2157_v18, %v2157_v18 }
 0x1ed   :  { %v2099_v21 = vpop.f32.mrf.mxu0  ;;  %2183 = vmatpush.bf16.xpose.msra.mxu3 %v2160_v19 }
 0x1f4   :  { %2184 = vmatmul.bf16.vlgmr.msra.gmra.mxu3 %v2172_v57 }
 0x1f5   :  { %v2149_v23 = vpop.f32.mrf.mxu0 }
 0x1f6   :  { %v2150_v24 = vadd.f32 %v2149_v23, %v2137_v62 }
 0x1f8   :  { %vm2154_vm6 = vcmp.gt.f32.partialorder %v2150_v24, 0.0  ;;  %v2156_v25 = vmul.f32 0.2, %v2150_v24 }
 0x1fa   :  { %v2158_v26 = vsel %vm2154_vm6, %v2150_v24, %v2156_v25 }
 0x1fb   :  { %v2161_v27 = vpack.c.bf16 %v2158_v26, %v2158_v26 }
 0x1fd   :  { %v2151_v28 = vpop.f32.mrf.mxu0  ;;  %2196 = vmatpush.bf16.xpose.msrb.mxu1 %v2161_v27 }
 0x204   :  { %2197 = vmatmul.bf16.vlgmr.msrb.gmra.mxu1 %v2173_v29 }
 0x277   :  { %v2185_v30 = vpop.f32.mrf.mxu3 }
 0x278   :  { %v2186_v34 = vadd.f32 %v2185_v30, %v2167_v32 }
 0x27f   :  { %v2187_v35 = vpop.f32.mrf.mxu3 }
 0x281   :  { %v2198_v22 = vpop.f32.mrf.mxu1 }
 0x282   :  { %v2199_v36 = vadd.f32 %v2198_v22, %v2186_v34 }
 0x284   :  { %2203 = vst.msk [vmem:[%s3727_s7] sm:$0xff] %vm2202_vm7, %v2199_v36 }
 0x289   :  { %v2200_v37 = vpop.f32.mrf.mxu1 }
 0x28a   :  { %2208 = vsyncpa [#allocation4], 1 }
 0x28b   :  { %2209 = vsyncpa [#allocation6], 1 }

</bundles_post_ra>
